<compile_context>
chip_gen: v7x
topology: tpu7x:2x2x1
jax: 0.10.0
libtpu: 0.0.40
codegen_flags: <defaults>
</compile_context>

<pallas_src>
import jax
import jax.numpy as jnp
from jax.experimental import pallas as pl
from jax.experimental.pallas import tpu as pltpu

BATCH = 1           # module hard-codes batch_size = 1
IN_FEATURES = 784   # 1 * 28 * 28
HIDDEN = 784
OUT_FEATURES = 10
OUT_PADDED = 128    # lane-dense output width (slice back to 10 in the wrapper)


def simplenet_kernel(x_ref, w1_ref, b1_ref, w2_ref, b2_ref, out_ref):
    # x_ref:  (BATCH, 784)        bf16
    # w1_ref: (784, 784)          bf16
    # b1_ref: (1, 784)            f32
    # w2_ref: (784, OUT_PADDED)   bf16  (columns 10..127 are zero)
    # b2_ref: (1, OUT_PADDED)     f32   (lanes 10..127 are -inf)
    # out_ref:(BATCH, OUT_PADDED) f32
    x = x_ref[...]

    # fc1 + ReLU  (bf16 MXU matmul, f32 accumulation; bias/ReLU in f32)
    h = jnp.dot(x, w1_ref[...], preferred_element_type=jnp.float32) + b1_ref[...]
    h = jnp.maximum(h, 0.0)

    # fc2 (bf16 MXU matmul, f32 accumulation). Padded bias lanes are -inf, so the
    # padded logits are -inf and drop out of the softmax exactly.
    logits = (
        jnp.dot(h.astype(jnp.bfloat16), w2_ref[...],
                preferred_element_type=jnp.float32)
        + b2_ref[...]
    )

    # Numerically stable softmax over the (lane-dense) last axis.
    m = jnp.max(logits, axis=-1, keepdims=True)
    e = jnp.exp(logits - m)                      # padded lanes -> exp(-inf) = 0
    denom = jnp.sum(e, axis=-1, keepdims=True)
    out_ref[...] = (e * pl.reciprocal(denom, approx=False)).astype(out_ref.dtype)


def prepare_params(w1, b1, w2, b2):
    """One-time host-side prep: cast matmul operands to bf16, pad fc2 to 128 lanes."""
    w1_k = w1.astype(jnp.bfloat16)
    b1_k = b1.astype(jnp.float32)
    w2_pad = jnp.zeros((HIDDEN, OUT_PADDED), jnp.bfloat16)
    w2_pad = w2_pad.at[:, :OUT_FEATURES].set(w2.astype(jnp.bfloat16))
    b2_pad = jnp.full((1, OUT_PADDED), -jnp.inf, jnp.float32)
    b2_pad = b2_pad.at[:, :OUT_FEATURES].set(b2.astype(jnp.float32))
    return w1_k, b1_k, w2_pad, b2_pad


def simplenet_forward(x_nchw, w1_k, b1_k, w2_pad, b2_pad):
    # Glue: flatten NCHW -> (batch, features), same as x.view(batch_size, -1).
    x2d = x_nchw.reshape(BATCH, -1).astype(jnp.bfloat16)

    # Everything fits comfortably in VMEM (~1.3 MiB of bf16 weights), so a single
    # gridless pallas_call with full-array blocks is used (no K tiling on purpose).
    vmem_spec = pl.BlockSpec(memory_space=pltpu.MemorySpace.VMEM)
    out_padded = pl.pallas_call(
        simplenet_kernel,
        out_shape=jax.ShapeDtypeStruct((BATCH, OUT_PADDED), jnp.float32),
        in_specs=[vmem_spec] * 5,
        out_specs=vmem_spec,
    )(x2d, w1_k, b1_k, w2_pad, b2_pad)
    return out_padded[:, :OUT_FEATURES]


def init_params(key):
    k1, k2, k3, k4 = jax.random.split(key, 4)
    # Deterministic synthetic init (shapes match nn.Linear(784,784) / nn.Linear(784,10)).
    # Stored as (in_features, out_features).
    w1 = jax.random.normal(k1, (IN_FEATURES, HIDDEN), jnp.float32) * 0.02
    b1 = jax.random.normal(k2, (1, HIDDEN), jnp.float32) * 0.02
    w2 = jax.random.normal(k3, (HIDDEN, OUT_FEATURES), jnp.float32) * 0.02
    b2 = jax.random.normal(k4, (1, OUT_FEATURES), jnp.float32) * 0.02
    return w1, b1, w2, b2


if __name__ == "__main__":
    key = jax.random.PRNGKey(0)
    kx, kp = jax.random.split(key)

    # MNIST-like NCHW input: (1, 1, 28, 28) -> flattens to 784 features.
    x = jax.random.normal(kx, (BATCH, 1, 28, 28), jnp.float32)
    w1, b1, w2, b2 = init_params(kp)
    w1_k, b1_k, w2_pad, b2_pad = prepare_params(w1, b1, w2, b2)

    out = simplenet_forward(x, w1_k, b1_k, w2_pad, b2_pad)
    out = jax.block_until_ready(out)
    assert out.shape == (BATCH, OUT_FEATURES)

    # Matching-precision pure-JAX reference (same bf16 casts, f32 accumulation).
    x2d_bf = x.reshape(BATCH, -1).astype(jnp.bfloat16)
    h_ref = jnp.maximum(
        jnp.dot(x2d_bf, w1.astype(jnp.bfloat16),
                preferred_element_type=jnp.float32) + b1, 0.0)
    logits_ref = jnp.dot(h_ref.astype(jnp.bfloat16), w2.astype(jnp.bfloat16),
                         preferred_element_type=jnp.float32) + b2
    ref = jax.nn.softmax(logits_ref, axis=1)
    assert jnp.allclose(out, ref, atol=2e-5, rtol=2e-5)

    # Loose sanity check against the full-f32 reference (bf16 weight quantization).
    h_f32 = jnp.maximum(x.reshape(BATCH, -1) @ w1 + b1, 0.0)
    ref_f32 = jax.nn.softmax(h_f32 @ w2 + b2, axis=1)
    assert jnp.allclose(out, ref_f32, atol=5e-2)

    assert jnp.allclose(jnp.sum(out, axis=1), 1.0, atol=1e-5)

    print("KERNEL_OK")
</pallas_src>

<mosaic_0001>
module attributes {stable_mosaic.version = 11 : i64} {
  func.func @simplenet_kernel(%arg0: memref<1x784xbf16, #tpu.memory_space<vmem>>, %arg1: memref<784x784xbf16, #tpu.memory_space<vmem>>, %arg2: memref<1x784xf32, #tpu.memory_space<vmem>>, %arg3: memref<784x128xbf16, #tpu.memory_space<vmem>>, %arg4: memref<1x128xf32, #tpu.memory_space<vmem>>, %arg5: memref<1x128xf32, #tpu.memory_space<vmem>>) attributes {dimension_semantics = [], scalar_prefetch = 0 : i64, scratch_operands = 0 : i64, tpu.core_type = #tpu.core_type<tc>} {
    %c0 = arith.constant 0 : index
    %c0_0 = arith.constant 0 : index
    %0 = vector.load %arg0[%c0, %c0_0] : memref<1x784xbf16, #tpu.memory_space<vmem>>, vector<1x784xbf16>
    %c0_1 = arith.constant 0 : index
    %c0_2 = arith.constant 0 : index
    %1 = vector.load %arg1[%c0_1, %c0_2] : memref<784x784xbf16, #tpu.memory_space<vmem>>, vector<784x784xbf16>
    %cst = arith.constant dense<0.000000e+00> : vector<1x784xf32>
    %2 = tpu.matmul %0, %1, %cst {dimension_numbers = #tpu.dot_dimension_numbers<[1], [0], [0], [1], [0, 0, 1, 1], [], []>} : vector<1x784xbf16>, vector<784x784xbf16>, vector<1x784xf32> -> vector<1x784xf32>
    %c0_3 = arith.constant 0 : index
    %c0_4 = arith.constant 0 : index
    %3 = vector.load %arg2[%c0_3, %c0_4] : memref<1x784xf32, #tpu.memory_space<vmem>>, vector<1x784xf32>
    %4 = arith.addf %2, %3 : vector<1x784xf32>
    %cst_5 = arith.constant 0.000000e+00 : f32
    %5 = vector.broadcast %cst_5 : f32 to vector<1x784xf32>
    %6 = arith.maximumf %4, %5 : vector<1x784xf32>
    %7 = arith.truncf %6 : vector<1x784xf32> to vector<1x784xbf16>
    %c0_6 = arith.constant 0 : index
    %c0_7 = arith.constant 0 : index
    %8 = vector.load %arg3[%c0_6, %c0_7] : memref<784x128xbf16, #tpu.memory_space<vmem>>, vector<784x128xbf16>
    %cst_8 = arith.constant dense<0.000000e+00> : vector<1x128xf32>
    %9 = tpu.matmul %7, %8, %cst_8 {dimension_numbers = #tpu.dot_dimension_numbers<[1], [0], [0], [1], [0, 0, 1, 1], [], []>} : vector<1x784xbf16>, vector<784x128xbf16>, vector<1x128xf32> -> vector<1x128xf32>
    %c0_9 = arith.constant 0 : index
    %c0_10 = arith.constant 0 : index
    %10 = vector.load %arg4[%c0_9, %c0_10] : memref<1x128xf32, #tpu.memory_space<vmem>>, vector<1x128xf32>
    %11 = arith.addf %9, %10 : vector<1x128xf32>
    %cst_11 = arith.constant dense<0xFF800000> : vector<1xf32>
    %12 = vector.multi_reduction <maximumf>, %11, %cst_11 [1] : vector<1x128xf32> to vector<1xf32>
    %13 = vector.shape_cast %12 : vector<1xf32> to vector<1x1xf32>
    %14 = vector.broadcast %13 : vector<1x1xf32> to vector<1x128xf32>
    %15 = arith.subf %11, %14 : vector<1x128xf32>
    %16 = math.exp %15 : vector<1x128xf32>
    %cst_12 = arith.constant dense<0.000000e+00> : vector<1xf32>
    %17 = vector.multi_reduction <add>, %16, %cst_12 [1] : vector<1x128xf32> to vector<1xf32>
    %18 = vector.shape_cast %17 : vector<1xf32> to vector<1x1xf32>
    %19 = tpu.reciprocal %18 : vector<1x1xf32> -> vector<1x1xf32>
    %20 = vector.broadcast %19 : vector<1x1xf32> to vector<1x128xf32>
    %21 = arith.mulf %16, %20 : vector<1x128xf32>
    %c0_13 = arith.constant 0 : index
    %c0_14 = arith.constant 0 : index
    %22 = vector.load %arg5[%c0_13, %c0_14] : memref<1x128xf32, #tpu.memory_space<vmem>>, vector<1x128xf32>
    tpu.vector_store %arg5[%c0_13, %c0_14], %21 {strides = array<i32>} : memref<1x128xf32, #tpu.memory_space<vmem>>, vector<1x128xf32>,
    return
  }
}

</mosaic_0001>

<bundles_post_ra>
// kernel: tpu_custom_call.1
= control target key start
LH: loop header
LB: loop body
LE: loop exit
PB: predicated region body
PF: predicated region fallthrough
CT: control target
= control target key end

     0   :  { %10 = vsyncpa [#allocation3], 0  ;;  %s5093_s0 = inlined_call_operand.hbm [shape: bf16[1,784], index: 0, kind: input, shape index: {}]   ;;  %s5094_s1 = inlined_call_operand.hbm [shape: bf16[784,784], index: 1, kind: input, shape index: {}]   ;;  %s5095_s2 = inlined_call_operand.hbm [shape: f32[1,784], index: 2, kind: input, shape index: {}]   ;;  %s5096_s3 = inlined_call_operand.hbm [shape: bf16[784,128], index: 3, kind: input, shape index: {}]   ;;  %s5097_s4 = inlined_call_operand.hbm [shape: f32[1,128], index: 4, kind: input, shape index: {}]   ;;  %s5098_s5 = inlined_call_operand.hbm [shape: f32[1,128], index: 5, kind: output, shape index: {}]  }
   0x1   :  { %11 = vsyncpa [#allocation6], 0 }
   0x2   :  { %12 = vsyncpa [#allocation9], 0 }
   0x3   :  { %13 = vsyncpa [#allocation4], 0  ;;  %s4872_s18 = smov [#allocation5]   ;;  %s4732_s22 = scalar_lea.hbm %s5094_s1, 43904 }
   0x4   :  { %s29_s19 = sshll.u32 %s4872_s18, 4  ;;  %p4733_p0 = scmp.ne.s32.totalorder %s5094_s1, %s4732_s22  ;;  %s30_s19 = int_to_ptr.vmem [resolvable:$true] %s29_s19 }
   0x5   :  { %p4736_p1 = scmp.lt.u32.totalorder %s4732_s22, %s5094_s1 }
   0x7   :  { %p4738_p2 = pnand %p4736_p1, %p4733_p0 }
   0x9   :  { %4741 = shalt.err (!%p4738_p2)
}
   0xa   :  { %s4742_s27 = scalar_lea.vmem %s30_s19, 43904  ;;  %p4747_p4 = scmp.lt.s32.totalorder %s30_s19, %s30_s19 }
   0xb   :  { %p4743_p3 = scmp.ne.s32.totalorder %s30_s19, %s4742_s27  ;;  %p4748_p5 = scmp.lt.s32.totalorder %s4742_s27, %s4742_s27 }
   0xd   :  { %p4749_p6 = por %p4748_p5, %p4747_p4 }
   0xf   :  { %p4750_p7 = pnand %p4749_p6, %p4743_p3 }
  0x11   :  { %4753 = shalt.err (!%p4750_p7)
}
  0x12   :  { %s4873_s28 = smov 448   ;;  %s4874_s29 = smov 28  }
  0x13   :  { %35 = dma.hbm_to_vmem [thread:$0]  %s5094_s1, 43904, %s30_s19, [#allocation6], %s4873_s28, %s4873_s28, %s4874_s29  }
  0x14   :  { %s4875_s7 = smov [#allocation8]   ;;  %s4754_s11 = scalar_lea.hbm %s5096_s3, 6272 }
  0x15   :  { %s51_s8 = sshll.u32 %s4875_s7, 4  ;;  %p4755_p8 = scmp.ne.s32.totalorder %s5096_s3, %s4754_s11  ;;  %s52_s8 = int_to_ptr.vmem [resolvable:$true] %s51_s8 }
  0x16   :  { %p4758_p9 = scmp.lt.u32.totalorder %s4754_s11, %s5096_s3 }
  0x18   :  { %p4760_p10 = pnand %p4758_p9, %p4755_p8 }
  0x1a   :  { %4763 = shalt.err (!%p4760_p10)
}
  0x1b   :  { %s4764_s16 = scalar_lea.vmem %s52_s8, 6272  ;;  %p4769_p12 = scmp.lt.s32.totalorder %s52_s8, %s52_s8 }
  0x1c   :  { %p4765_p11 = scmp.ne.s32.totalorder %s52_s8, %s4764_s16  ;;  %p4770_p13 = scmp.lt.s32.totalorder %s4764_s16, %s4764_s16 }
  0x1e   :  { %p4771_p0 = por %p4770_p13, %p4769_p12 }
  0x20   :  { %p4772_p1 = pnand %p4771_p0, %p4765_p11 }
  0x22   :  { %4775 = shalt.err (!%p4772_p1)
}
  0x23   :  { %s4876_s1 = smov 64   ;;  %s4877_s17 = smov 4  }
  0x24   :  { %57 = dma.hbm_to_vmem [thread:$0]  %s5096_s3, 6272, %s52_s8, [#allocation9], %s4876_s1, %s4876_s1, %s4877_s17  }
  0x25   :  { %s4878_s20 = smov [#allocation2]   ;;  %s4879_s22 = smov [#allocation7]  }
  0x26   :  { %s20_s21 = sshll.u32 %s4878_s20, 4  ;;  %s42_s23 = sshll.u32 %s4879_s22, 4  ;;  %s21_s21 = int_to_ptr.vmem [resolvable:$true] %s20_s21  ;;  %s43_s23 = int_to_ptr.vmem [resolvable:$true] %s42_s23 }
  0x27   :  { %s4776_s26 = scalar_lea.hbm %s5093_s0, 112 }
  0x28   :  { %p4777_p2 = scmp.ne.s32.totalorder %s5093_s0, %s4776_s26  ;;  %p4780_p3 = scmp.lt.u32.totalorder %s4776_s26, %s5093_s0 }
  0x2a   :  { %p4782_p4 = pnand %p4780_p3, %p4777_p2 }
  0x2c   :  { %4785 = shalt.err (!%p4782_p4)
}
  0x2d   :  { %s4786_s3 = scalar_lea.vmem %s21_s21, 112  ;;  %s4790_s6 = scalar_lea.vmem %s21_s21, 128 }
  0x2e   :  { %p4787_p5 = scmp.ne.s32.totalorder %s21_s21, %s4786_s3  ;;  %p4791_p6 = scmp.lt.s32.totalorder %s21_s21, %s21_s21 }
  0x2f   :  { %p4792_p7 = scmp.lt.s32.totalorder %s4790_s6, %s4786_s3 }
  0x31   :  { %p4793_p8 = por %p4792_p7, %p4791_p6 }
  0x33   :  { %p4794_p9 = pnand %p4793_p8, %p4787_p5 }
  0x35   :  { %4797 = shalt.err (!%p4794_p9)
}
  0x36   :  { %23 = dma.hbm_to_vmem [thread:$0]  %s5093_s0, 112, %s21_s21, [#allocation3]  }
  0x37   :  { %s4798_s11 = scalar_lea.hbm %s5095_s2, 112 }
  0x38   :  { %p4799_p10 = scmp.ne.s32.totalorder %s5095_s2, %s4798_s11  ;;  %p4802_p11 = scmp.lt.u32.totalorder %s4798_s11, %s5095_s2 }
  0x3a   :  { %p4804_p12 = pnand %p4802_p11, %p4799_p10 }
  0x3c   :  { %4807 = shalt.err (!%p4804_p12)
}
  0x3d   :  { %s4808_s16 = scalar_lea.vmem %s43_s23, 112  ;;  %s4812_s1 = scalar_lea.vmem %s43_s23, 128 }
  0x3e   :  { %p4809_p13 = scmp.ne.s32.totalorder %s43_s23, %s4808_s16  ;;  %p4813_p0 = scmp.lt.s32.totalorder %s43_s23, %s43_s23 }
  0x3f   :  { %p4814_p1 = scmp.lt.s32.totalorder %s4812_s1, %s4808_s16 }
  0x41   :  { %p4815_p2 = por %p4814_p1, %p4813_p0 }
  0x43   :  { %p4816_p3 = pnand %p4815_p2, %p4809_p13 }
  0x45   :  { %4819 = shalt.err (!%p4816_p3)
}
  0x46   :  { %45 = dma.hbm_to_vmem [thread:$0]  %s5095_s2, 112, %s43_s23, [#allocation6]  }
  0x47   :  { %s4880_s18 = smov [#allocation10]   ;;  %s4820_s22 = scalar_lea.hbm %s5097_s4, 16 }
  0x48   :  { %s64_s19 = sshll.u32 %s4880_s18, 4  ;;  %p4821_p4 = scmp.ne.s32.totalorder %s5097_s4, %s4820_s22  ;;  %s65_s19 = int_to_ptr.vmem [resolvable:$true] %s64_s19 }
  0x49   :  { %p4824_p5 = scmp.lt.u32.totalorder %s4820_s22, %s5097_s4 }
  0x4b   :  { %p4826_p6 = pnand %p4824_p5, %p4821_p4 }
  0x4d   :  { %4829 = shalt.err (!%p4826_p6)
}
  0x4e   :  { %s4830_s28 = scalar_lea.vmem %s65_s19, 16  ;;  %s4834_s2 = scalar_lea.vmem %s65_s19, 32 }
  0x4f   :  { %p4831_p7 = scmp.ne.s32.totalorder %s65_s19, %s4830_s28  ;;  %p4835_p8 = scmp.lt.s32.totalorder %s65_s19, %s65_s19 }
  0x50   :  { %p4836_p9 = scmp.lt.s32.totalorder %s4834_s2, %s4830_s28 }
  0x52   :  { %p4837_p10 = por %p4836_p9, %p4835_p8 }
  0x54   :  { %p4838_p11 = pnand %p4837_p10, %p4831_p7 }
  0x56   :  { %4841 = shalt.err (!%p4838_p11)
}
  0x57   :  { %67 = dma.hbm_to_vmem [thread:$0]  %s5097_s4, 16, %s65_s19, [#allocation9]  }
  0x58   :  { %4864 = dma.done.wait [#allocation3], 112  }
  0x59   :  { %4865 = vsyncadd [#allocation3], 4294967184 }
  0x5a   :  { %4866 = dma.done.wait [#allocation6], 44016  }
  0x5b   :  { %4867 = vsyncadd [#allocation6], 4294923280 }
  0x5c   :  { %4868 = dma.done.wait [#allocation9], 6288  }
  0x5d   :  { %4869 = vsyncadd [#allocation9], 4294961008  ;;  %v4881_v0 = vmov 0   ;;  %v4882_v1 = vmov 1966171168   ;;  %v483_v3 = vlaneseq  ;;  %vm2333_vm0 = vcmask 130048  }
  0x5e   :  { %2492 = vmatprep.mubr.bf16.mxu1 %v4881_v0  ;;  %v481_v2 = vunpack.c.l.s4 %v4882_v1  ;;  %v4188_v4 = vld [vmem:[#allocation5 + $0x4] ss:$28 sps:$4 sm:$0xff]   ;;  %v4194_v10 = vld [vmem:[#allocation5 + $0x3c] ss:$28 sps:$4 sm:$0xff]   ;;  %v4199_v13 = vld [vmem:[#allocation5 + $0xc] ss:$28 sps:$4 sm:$0xff]  }
  0x5f   :  { %v4977_v6 = vshrl.u32 %v483_v3, 7  ;;  %v4190_v7 = vld [vmem:[#allocation5] ss:$28 sps:$4 sm:$0xff]   ;;  %2337 = vmatprep.subr.bf16.mxu0 %v4188_v4  ;;  %v4196_v11 = vld [vmem:[#allocation5 + $0x38] ss:$28 sps:$4 sm:$0xff]   ;;  %vm4884_vm1 = vmmov 0  }
  0x60   :  { %v482_v5 = vunpack.c.0.s8 %v481_v2  ;;  %v4191_v8 = vld [vmem:[#allocation5 + $0xa84] ss:$28 sps:$4 sm:$0xff]   ;;  %2338 = vmatpush1.bf16.msra.mxu0 %v4190_v7  ;;  %v84_v14 = vld [vmem:[#allocation2] sm:$0x7f]  ;;  %v4201_v16 = vld [vmem:[#allocation5 + $0x74] ss:$28 sps:$4 sm:$0xff]  }
  0x61   :  { %v4193_v9 = vld [vmem:[#allocation5 + $0xa80] ss:$28 sps:$4 sm:$0xff]   ;;  %2460 = vmatprep.subr.bf16.mxu1 %v4191_v8  ;;  %2339 = vmatprep.subr.bf16.mxu0 %v4194_v10  ;;  %v479_v15 = vcombine.high %v84_v14, %v84_v14  ;;  %v4203_v18 = vld [vmem:[#allocation5 + $0x70] ss:$28 sps:$4 sm:$0xff]   ;;  %v4197_v22 = vld [vmem:[#allocation5 + $0x8] ss:$28 sps:$4 sm:$0xff]  }
  0x62   :  { %v4980_v12 = vsub.s32 %v482_v5, %v4977_v6  ;;  %2461 = vmatpush1.bf16.msra.mxu1 %v4193_v9  ;;  %v4207_v21 = vld [vmem:[#allocation5 + $0xac] ss:$28 sps:$4 sm:$0xff]   ;;  %v4206_v24 = vld [vmem:[#allocation5 + $0x44] ss:$28 sps:$4 sm:$0xff]   ;;  %v4212_v30 = vld [vmem:[#allocation5 + $0x7c] ss:$28 sps:$4 sm:$0xff]  }
  0x63   :  { %2501 = vmatprep.subr.bf16.mxu1 %v4199_v13  ;;  %v4209_v26 = vld [vmem:[#allocation5 + $0xa8] ss:$28 sps:$4 sm:$0xff]   ;;  %v4204_v29 = vld [vmem:[#allocation5 + $0x40] ss:$28 sps:$4 sm:$0xff]   ;;  %v4210_v33 = vld [vmem:[#allocation5 + $0x78] ss:$28 sps:$4 sm:$0xff]  }
  0x64   :  { %v4983_v17 = vrot.slane %v84_v14, %v4980_v12  ;;  %2340 = vmatpush1.bf16.msra.mxu0 %v4196_v11  ;;  %v4986_v19 = vrot.slane %v479_v15, %v4980_v12  ;;  %v4213_v28 = vld [vmem:[#allocation5 + $0xe4] ss:$28 sps:$4 sm:$0xff]   ;;  %v4219_v32 = vld [vmem:[#allocation5 + $0x11c] ss:$28 sps:$4 sm:$0xff]   ;;  %v4218_v34 = vld [vmem:[#allocation5 + $0xb4] ss:$28 sps:$4 sm:$0xff]  }
  0x65   :  { %2341 = vmatprep.subr.bf16.mxu0 %v4201_v16  ;;  %v4215_v31 = vld [vmem:[#allocation5 + $0xe0] ss:$28 sps:$4 sm:$0xff]   ;;  %v4221_v35 = vld [vmem:[#allocation5 + $0x118] ss:$28 sps:$4 sm:$0xff]   ;;  %v4216_v37 = vld [vmem:[#allocation5 + $0xb0] ss:$28 sps:$4 sm:$0xff]  }
  0x66   :  { %v494_v20 = vcombine.high %v4983_v17, %v4983_v17  ;;  %v4992_v23 = vrot.slane %v4986_v19, %v4980_v12  ;;  %v4225_v36 = vld [vmem:[#allocation5 + $0x154] ss:$28 sps:$4 sm:$0xff]   ;;  %v4224_v38 = vld [vmem:[#allocation5 + $0xec] ss:$28 sps:$4 sm:$0xff]   ;;  %v4230_v42 = vld [vmem:[#allocation5 + $0x124] ss:$28 sps:$4 sm:$0xff]  }
  0x67   :  { %v4227_v39 = vld [vmem:[#allocation5 + $0x150] ss:$28 sps:$4 sm:$0xff]   ;;  %v4222_v41 = vld [vmem:[#allocation5 + $0xe8] ss:$28 sps:$4 sm:$0xff]   ;;  %v4228_v45 = vld [vmem:[#allocation5 + $0x120] ss:$28 sps:$4 sm:$0xff]  }
  0x68   :  { %v4995_v25 = vrot.slane %v494_v20, %v4980_v12  ;;  %2342 = vmatpush1.bf16.msra.mxu0 %v4203_v18  ;;  %v4999_v27 = vcombine.high %v4992_v23, %v4992_v23  ;;  %v4231_v40 = vld [vmem:[#allocation5 + $0x18c] ss:$28 sps:$4 sm:$0xff]   ;;  %v4237_v44 = vld [vmem:[#allocation5 + $0x1c4] ss:$28 sps:$4 sm:$0xff]   ;;  %v4236_v46 = vld [vmem:[#allocation5 + $0x15c] ss:$28 sps:$4 sm:$0xff]   ;;  %v5007_v20 = vrot.slane %v4983_v17, %v4980_v12  ;;  %v495_v17 = vcombine.high %v4986_v19, %v4986_v19 }
  0x69   :  { %2343 = vmatprep.subr.bf16.mxu0 %v4207_v21  ;;  %v4233_v43 = vld [vmem:[#allocation5 + $0x188] ss:$28 sps:$4 sm:$0xff]   ;;  %v4239_v47 = vld [vmem:[#allocation5 + $0x1c0] ss:$28 sps:$4 sm:$0xff]   ;;  %v4234_v49 = vld [vmem:[#allocation5 + $0x158] ss:$28 sps:$4 sm:$0xff]  }
  0x6a   :  { %2369 = vmatprep.mubr.bf16.mxu0 %v4995_v25  ;;  %3932 = vmatmul.mubr.msk.bf16.vlgmr.msra.gmra.mrb[0].mxu1 %vm2333_vm0, %v4999_v27  ;;  %v4243_v48 = vld [vmem:[#allocation5 + $0x1fc] ss:$28 sps:$4 sm:$0xff]   ;;  %v4242_v50 = vld [vmem:[#allocation5 + $0x194] ss:$28 sps:$4 sm:$0xff]   ;;  %v4248_v54 = vld [vmem:[#allocation5 + $0x1cc] ss:$28 sps:$4 sm:$0xff]  }
  0x6b   :  { %2502 = vmatpush1.bf16.msra.mxu1 %v4197_v22  ;;  %2533 = vmatprep.mubr.bf16.mxu1 %v4995_v25  ;;  %v4245_v51 = vld [vmem:[#allocation5 + $0x1f8] ss:$28 sps:$4 sm:$0xff]   ;;  %v4240_v53 = vld [vmem:[#allocation5 + $0x190] ss:$28 sps:$4 sm:$0xff]   ;;  %v4246_v57 = vld [vmem:[#allocation5 + $0x1c8] ss:$28 sps:$4 sm:$0xff]  }
  0x6c   :  { %2344 = vmatpush1.bf16.msra.mxu0 %v4209_v26  ;;  %2503 = vmatprep.subr.bf16.mxu1 %v4206_v24  ;;  %v4249_v52 = vld [vmem:[#allocation5 + $0x234] ss:$28 sps:$4 sm:$0xff]   ;;  %v4255_v56 = vld [vmem:[#allocation5 + $0x26c] ss:$28 sps:$4 sm:$0xff]   ;;  %v4254_v58 = vld [vmem:[#allocation5 + $0x204] ss:$28 sps:$4 sm:$0xff]   ;;  %v5011_v24 = vcombine.high %v4995_v25, %v4995_v25 }
  0x6d   :  { %2345 = vmatprep.subr.bf16.mxu0 %v4213_v28  ;;  %v4251_v55 = vld [vmem:[#allocation5 + $0x230] ss:$28 sps:$4 sm:$0xff]   ;;  %v4257_v59 = vld [vmem:[#allocation5 + $0x268] ss:$28 sps:$4 sm:$0xff]   ;;  %v4252_v61 = vld [vmem:[#allocation5 + $0x200] ss:$28 sps:$4 sm:$0xff]  }
  0x6e   :  { %v4261_v60 = vld [vmem:[#allocation5 + $0x2a4] ss:$28 sps:$4 sm:$0xff]   ;;  %v4260_v62 = vld [vmem:[#allocation5 + $0x23c] ss:$28 sps:$4 sm:$0xff]   ;;  %v4266_v3 = vld [vmem:[#allocation5 + $0x274] ss:$28 sps:$4 sm:$0xff]  }
  0x6f   :  { %2504 = vmatpush1.bf16.msra.mxu1 %v4204_v29  ;;  %v4263_v63 = vld [vmem:[#allocation5 + $0x2a0] ss:$28 sps:$4 sm:$0xff]   ;;  %v4258_v2 = vld [vmem:[#allocation5 + $0x238] ss:$28 sps:$4 sm:$0xff]   ;;  %v4264_v7 = vld [vmem:[#allocation5 + $0x270] ss:$28 sps:$4 sm:$0xff]  }
  0x70   :  { %2346 = vmatpush1.bf16.msra.mxu0 %v4215_v31  ;;  %2505 = vmatprep.subr.bf16.mxu1 %v4212_v30  ;;  %v4267_v1 = vld [vmem:[#allocation5 + $0x2dc] ss:$28 sps:$4 sm:$0xff]   ;;  %v4273_v5 = vld [vmem:[#allocation5 + $0x314] ss:$28 sps:$4 sm:$0xff]   ;;  %v4272_v8 = vld [vmem:[#allocation5 + $0x2ac] ss:$28 sps:$4 sm:$0xff]   ;;  %v5018_v31 = vrot.slane %v495_v17, %v4980_v12 }
  0x71   :  { %2347 = vmatprep.subr.bf16.mxu0 %v4219_v32  ;;  %v4269_v4 = vld [vmem:[#allocation5 + $0x2d8] ss:$28 sps:$4 sm:$0xff]   ;;  %v4275_v9 = vld [vmem:[#allocation5 + $0x310] ss:$28 sps:$4 sm:$0xff]   ;;  %v4270_v11 = vld [vmem:[#allocation5 + $0x2a8] ss:$28 sps:$4 sm:$0xff]  }
  0x72   :  { %v4279_v10 = vld [vmem:[#allocation5 + $0x34c] ss:$28 sps:$4 sm:$0xff]   ;;  %v4278_v13 = vld [vmem:[#allocation5 + $0x2e4] ss:$28 sps:$4 sm:$0xff]   ;;  %v4284_v18 = vld [vmem:[#allocation5 + $0x31c] ss:$28 sps:$4 sm:$0xff]  }
  0x73   :  { %2506 = vmatpush1.bf16.msra.mxu1 %v4210_v33  ;;  %v4281_v14 = vld [vmem:[#allocation5 + $0x348] ss:$28 sps:$4 sm:$0xff]   ;;  %v4276_v16 = vld [vmem:[#allocation5 + $0x2e0] ss:$28 sps:$4 sm:$0xff]   ;;  %v4282_v26 = vld [vmem:[#allocation5 + $0x318] ss:$28 sps:$4 sm:$0xff]  }
  0x74   :  { %2348 = vmatpush1.bf16.msra.mxu0 %v4221_v35  ;;  %2507 = vmatprep.subr.bf16.mxu1 %v4218_v34  ;;  %v4287_v15 = vld [vmem:[#allocation5 + $0x384] ss:$28 sps:$4 sm:$0xff]   ;;  %v4293_v22 = vld [vmem:[#allocation5 + $0x3bc] ss:$28 sps:$4 sm:$0xff]   ;;  %v4290_v28 = vld [vmem:[#allocation5 + $0x354] ss:$28 sps:$4 sm:$0xff]  }
  0x75   :  { %2349 = vmatprep.subr.bf16.mxu0 %v4225_v36  ;;  %v4285_v21 = vld [vmem:[#allocation5 + $0x380] ss:$28 sps:$4 sm:$0xff]   ;;  %v4291_v29 = vld [vmem:[#allocation5 + $0x3b8] ss:$28 sps:$4 sm:$0xff]   ;;  %v4288_v32 = vld [vmem:[#allocation5 + $0x350] ss:$28 sps:$4 sm:$0xff]  }
  0x76   :  { %v4299_v30 = vld [vmem:[#allocation5 + $0x3f4] ss:$28 sps:$4 sm:$0xff]   ;;  %v4296_v33 = vld [vmem:[#allocation5 + $0x38c] ss:$28 sps:$4 sm:$0xff]   ;;  %v4300_v12 = vld [vmem:[#allocation5 + $0x3c0] ss:$28 sps:$4 sm:$0xff]  }
  0x77   :  { %2508 = vmatpush1.bf16.msra.mxu1 %v4216_v37  ;;  %v4297_v34 = vld [vmem:[#allocation5 + $0x3f0] ss:$28 sps:$4 sm:$0xff]   ;;  %v4294_v36 = vld [vmem:[#allocation5 + $0x388] ss:$28 sps:$4 sm:$0xff]   ;;  %vm3559_vm2 = vcmask 1040384   ;;  %s4885_s4 = smov [#allocation11]  }
  0x78   :  { %2350 = vmatpush1.bf16.msra.mxu0 %v4227_v39  ;;  %2509 = vmatprep.subr.bf16.mxu1 %v4224_v38  ;;  %v4305_v35 = vld [vmem:[#allocation5 + $0x42c] ss:$28 sps:$4 sm:$0xff]   ;;  %v4302_v37 = vld [vmem:[#allocation5 + $0x3c4] ss:$28 sps:$4 sm:$0xff]   ;;  %v4308_v39 = vld [vmem:[#allocation5 + $0x3fc] ss:$28 sps:$4 sm:$0xff]  }
  0x79   :  { %2351 = vmatprep.subr.bf16.mxu0 %v4231_v40  ;;  %v4303_v19 = vld [vmem:[#allocation5 + $0x428] ss:$28 sps:$4 sm:$0xff]   ;;  %v4309_v40 = vld [vmem:[#allocation5 + $0x460] ss:$28 sps:$4 sm:$0xff]   ;;  %s3578_s30 = sshll.u32 %s4885_s4, 4  ;;  %s3579_s30 = int_to_ptr.vmem [resolvable:$true] %s3578_s30 }
  0x7a   :  { %v4311_v38 = vld [vmem:[#allocation5 + $0x464] ss:$28 sps:$4 sm:$0xff]   ;;  %s4842_s3 = scalar_lea.vmem %s3579_s30, 16  ;;  %s4846_s6 = scalar_lea.vmem %s3579_s30, 32 }
  0x7b   :  { %2510 = vmatpush1.bf16.msra.mxu1 %v4222_v41  ;;  %v4317_v41 = vld [vmem:[#allocation5 + $0x49c] ss:$28 sps:$4 sm:$0xff]   ;;  %v4375_v17 = vld [vmem:[#allocation5 + $0x6c8] ss:$28 sps:$4 sm:$0xff]   ;;  %p4843_p12 = scmp.ne.s32.totalorder %s3579_s30, %s4842_s3  ;;  %p4847_p13 = scmp.lt.s32.totalorder %s3579_s30, %s3579_s30 }
  0x7c   :  { %2352 = vmatpush1.bf16.msra.mxu0 %v4233_v43  ;;  %2511 = vmatprep.subr.bf16.mxu1 %v4230_v42  ;;  %v4306_v42 = vld [vmem:[#allocation5 + $0x3f8] ss:$28 sps:$4 sm:$0xff]   ;;  %p4848_p0 = scmp.lt.s32.totalorder %s4846_s6, %s4842_s3 }
  0x7d   :  { %2353 = vmatprep.subr.bf16.mxu0 %v4237_v44  ;;  %v4314_v43 = vld [vmem:[#allocation5 + $0x434] ss:$28 sps:$4 sm:$0xff]  }
  0x7e   :  { %v4315_v44 = vld [vmem:[#allocation5 + $0x498] ss:$28 sps:$4 sm:$0xff]   ;;  %p4849_p1 = por %p4848_p0, %p4847_p13 }
  0x7f   :  { %2512 = vmatpush1.bf16.msra.mxu1 %v4228_v45  ;;  %v4323_v45 = vld [vmem:[#allocation5 + $0x4d4] ss:$28 sps:$4 sm:$0xff]  }
  0x80   :  { %2354 = vmatpush1.bf16.msra.mxu0 %v4239_v47  ;;  %2513 = vmatprep.subr.bf16.mxu1 %v4236_v46  ;;  %v4312_v46 = vld [vmem:[#allocation5 + $0x430] ss:$28 sps:$4 sm:$0xff]   ;;  %p4850_p2 = pnand %p4849_p1, %p4843_p12 }
  0x81   :  { %2355 = vmatprep.subr.bf16.mxu0 %v4243_v48  ;;  %v4320_v47 = vld [vmem:[#allocation5 + $0x46c] ss:$28 sps:$4 sm:$0xff]  }
  0x82   :  { %v4321_v48 = vld [vmem:[#allocation5 + $0x4d0] ss:$28 sps:$4 sm:$0xff]  }
  0x83   :  { %2514 = vmatpush1.bf16.msra.mxu1 %v4234_v49  ;;  %v4329_v49 = vld [vmem:[#allocation5 + $0x50c] ss:$28 sps:$4 sm:$0xff]  }
  0x84   :  { %2356 = vmatpush1.bf16.msra.mxu0 %v4245_v51  ;;  %2515 = vmatprep.subr.bf16.mxu1 %v4242_v50  ;;  %v4318_v50 = vld [vmem:[#allocation5 + $0x468] ss:$28 sps:$4 sm:$0xff]  }
  0x85   :  { %2357 = vmatprep.subr.bf16.mxu0 %v4249_v52  ;;  %v4326_v51 = vld [vmem:[#allocation5 + $0x4a4] ss:$28 sps:$4 sm:$0xff]  }
  0x86   :  { %v4327_v52 = vld [vmem:[#allocation5 + $0x508] ss:$28 sps:$4 sm:$0xff]  }
  0x87   :  { %2516 = vmatpush1.bf16.msra.mxu1 %v4240_v53  ;;  %v4335_v53 = vld [vmem:[#allocation5 + $0x544] ss:$28 sps:$4 sm:$0xff]  }
  0x88   :  { %2358 = vmatpush1.bf16.msra.mxu0 %v4251_v55  ;;  %2517 = vmatprep.subr.bf16.mxu1 %v4248_v54  ;;  %v4324_v54 = vld [vmem:[#allocation5 + $0x4a0] ss:$28 sps:$4 sm:$0xff]  }
  0x89   :  { %2359 = vmatprep.subr.bf16.mxu0 %v4255_v56  ;;  %v4332_v55 = vld [vmem:[#allocation5 + $0x4dc] ss:$28 sps:$4 sm:$0xff]  }
  0x8a   :  { %v4333_v56 = vld [vmem:[#allocation5 + $0x540] ss:$28 sps:$4 sm:$0xff]  }
  0x8b   :  { %2518 = vmatpush1.bf16.msra.mxu1 %v4246_v57  ;;  %v4341_v57 = vld [vmem:[#allocation5 + $0x57c] ss:$28 sps:$4 sm:$0xff]  }
  0x8c   :  { %2360 = vmatpush1.bf16.msra.mxu0 %v4257_v59  ;;  %2519 = vmatprep.subr.bf16.mxu1 %v4254_v58  ;;  %v4330_v58 = vld [vmem:[#allocation5 + $0x4d8] ss:$28 sps:$4 sm:$0xff]  }
  0x8d   :  { %2361 = vmatprep.subr.bf16.mxu0 %v4261_v60  ;;  %v4338_v59 = vld [vmem:[#allocation5 + $0x514] ss:$28 sps:$4 sm:$0xff]  }
  0x8e   :  { %v4339_v60 = vld [vmem:[#allocation5 + $0x578] ss:$28 sps:$4 sm:$0xff]  }
  0x8f   :  { %2520 = vmatpush1.bf16.msra.mxu1 %v4252_v61  ;;  %v4347_v61 = vld [vmem:[#allocation5 + $0x5b4] ss:$28 sps:$4 sm:$0xff]  }
  0x90   :  { %2362 = vmatpush1.bf16.msra.mxu0 %v4263_v63  ;;  %2521 = vmatprep.subr.bf16.mxu1 %v4260_v62  ;;  %v4336_v62 = vld [vmem:[#allocation5 + $0x510] ss:$28 sps:$4 sm:$0xff]  }
  0x91   :  { %2363 = vmatprep.subr.bf16.mxu0 %v4267_v1  ;;  %v4344_v63 = vld [vmem:[#allocation5 + $0x54c] ss:$28 sps:$4 sm:$0xff]  }
  0x92   :  { %v4345_v1 = vld [vmem:[#allocation5 + $0x5b0] ss:$28 sps:$4 sm:$0xff]  }
  0x93   :  { %2522 = vmatpush1.bf16.msra.mxu1 %v4258_v2  ;;  %v4353_v2 = vld [vmem:[#allocation5 + $0x5ec] ss:$28 sps:$4 sm:$0xff]  }
  0x94   :  { %2364 = vmatpush1.bf16.msra.mxu0 %v4269_v4  ;;  %2523 = vmatprep.subr.bf16.mxu1 %v4266_v3  ;;  %v4342_v3 = vld [vmem:[#allocation5 + $0x548] ss:$28 sps:$4 sm:$0xff]  }
  0x95   :  { %2365 = vmatprep.subr.bf16.mxu0 %v4273_v5  ;;  %v4350_v4 = vld [vmem:[#allocation5 + $0x584] ss:$28 sps:$4 sm:$0xff]  }
  0x96   :  { %v4351_v5 = vld [vmem:[#allocation5 + $0x5e8] ss:$28 sps:$4 sm:$0xff]  }
  0x97   :  { %2524 = vmatpush1.bf16.msra.mxu1 %v4264_v7  ;;  %v4359_v7 = vld [vmem:[#allocation5 + $0x624] ss:$28 sps:$4 sm:$0xff]  }
  0x98   :  { %2366 = vmatpush1.bf16.msra.mxu0 %v4275_v9  ;;  %2525 = vmatprep.subr.bf16.mxu1 %v4272_v8  ;;  %v4348_v8 = vld [vmem:[#allocation5 + $0x580] ss:$28 sps:$4 sm:$0xff]  }
  0x99   :  { %2367 = vmatprep.subr.bf16.mxu0 %v4279_v10  ;;  %v4356_v9 = vld [vmem:[#allocation5 + $0x5bc] ss:$28 sps:$4 sm:$0xff]  }
  0x9a   :  { %v4357_v10 = vld [vmem:[#allocation5 + $0x620] ss:$28 sps:$4 sm:$0xff]  }
  0x9b   :  { %2526 = vmatpush1.bf16.msra.mxu1 %v4270_v11  ;;  %v4365_v11 = vld [vmem:[#allocation5 + $0x65c] ss:$28 sps:$4 sm:$0xff]  }
  0x9c   :  { %2368 = vmatpush1.bf16.msra.mxu0 %v4281_v14  ;;  %2527 = vmatprep.subr.bf16.mxu1 %v4278_v13  ;;  %v4354_v13 = vld [vmem:[#allocation5 + $0x5b8] ss:$28 sps:$4 sm:$0xff]  }
  0x9d   :  { %2378 = vmatprep.subr.bf16.mxu0 %v4287_v15  ;;  %v4362_v14 = vld [vmem:[#allocation5 + $0x5f4] ss:$28 sps:$4 sm:$0xff]  }
  0x9e   :  { %v4363_v15 = vld [vmem:[#allocation5 + $0x658] ss:$28 sps:$4 sm:$0xff]  }
  0x9f   :  { %2370 = vmatmul.mubr.bf16.vlgmr.msra.gmra.mrb[0].mxu0 %v5007_v20  ;;  %2528 = vmatpush1.bf16.msra.mxu1 %v4276_v16  ;;  %v4371_v16 = vld [vmem:[#allocation5 + $0x694] ss:$28 sps:$4 sm:$0xff]  }
  0xa0   :  { %2379 = vmatpush1.bf16.msra.mxu0 %v4285_v21  ;;  %2529 = vmatprep.subr.bf16.mxu1 %v4284_v18  ;;  %v4360_v18 = vld [vmem:[#allocation5 + $0x5f0] ss:$28 sps:$4 sm:$0xff]  }
  0xa1   :  { %2380 = vmatprep.subr.bf16.mxu0 %v4293_v22  ;;  %2410 = vmatprep.mubr.bf16.mxu0 %v5011_v24  ;;  %v4368_v21 = vld [vmem:[#allocation5 + $0x62c] ss:$28 sps:$4 sm:$0xff]  }
  0xa2   :  { %v4369_v22 = vld [vmem:[#allocation5 + $0x690] ss:$28 sps:$4 sm:$0xff]  }
  0xa3   :  { %2530 = vmatpush1.bf16.msra.mxu1 %v4282_v26  ;;  %v4377_v26 = vld [vmem:[#allocation5 + $0x6cc] ss:$28 sps:$4 sm:$0xff]  }
  0xa4   :  { %2381 = vmatpush1.bf16.msra.mxu0 %v4291_v29  ;;  %2531 = vmatprep.subr.bf16.mxu1 %v4290_v28  ;;  %v4366_v28 = vld [vmem:[#allocation5 + $0x628] ss:$28 sps:$4 sm:$0xff]  }
  0xa5   :  { %2382 = vmatprep.subr.bf16.mxu0 %v4299_v30  ;;  %v4374_v29 = vld [vmem:[#allocation5 + $0x664] ss:$28 sps:$4 sm:$0xff]  }
  0xa6   :  { %v4383_v30 = vld [vmem:[#allocation5 + $0x704] ss:$28 sps:$4 sm:$0xff]  }
  0xa7   :  { %2532 = vmatpush1.bf16.msra.mxu1 %v4288_v32  ;;  %v4372_v32 = vld [vmem:[#allocation5 + $0x660] ss:$28 sps:$4 sm:$0xff]  }
  0xa8   :  { %2383 = vmatpush1.bf16.msra.mxu0 %v4297_v34  ;;  %2542 = vmatprep.subr.bf16.mxu1 %v4296_v33  ;;  %v4380_v33 = vld [vmem:[#allocation5 + $0x69c] ss:$28 sps:$4 sm:$0xff]   ;;  %v5024_v34 = vcombine.high %v5007_v20, %v5007_v20 }
  0xa9   :  { %2384 = vmatprep.subr.bf16.mxu0 %v4305_v35  ;;  %v4381_v35 = vld [vmem:[#allocation5 + $0x700] ss:$28 sps:$4 sm:$0xff]  }
  0xaa   :  { %2534 = vmatmul.mubr.bf16.vlgmr.msra.gmra.mrb[4].mxu1 %v5007_v20 }
  0xab   :  { %2543 = vmatpush1.bf16.msra.mxu1 %v4294_v36  ;;  %2574 = vmatprep.mubr.bf16.mxu1 %v5011_v24  ;;  %v4389_v36 = vld [vmem:[#allocation5 + $0x73c] ss:$28 sps:$4 sm:$0xff]  }
  0xac   :  { %2385 = vmatpush1.bf16.msra.mxu0 %v4303_v19  ;;  %2544 = vmatprep.subr.bf16.mxu1 %v4302_v37  ;;  %v4378_v37 = vld [vmem:[#allocation5 + $0x698] ss:$28 sps:$4 sm:$0xff]  }
  0xad   :  { %2386 = vmatprep.subr.bf16.mxu0 %v4311_v38  ;;  %v4386_v19 = vld [vmem:[#allocation5 + $0x6d4] ss:$28 sps:$4 sm:$0xff]  }
  0xae   :  { %v4387_v38 = vld [vmem:[#allocation5 + $0x738] ss:$28 sps:$4 sm:$0xff]  }
  0xaf   :  { %2545 = vmatpush1.bf16.msra.mxu1 %v4300_v12  ;;  %v4395_v12 = vld [vmem:[#allocation5 + $0x774] ss:$28 sps:$4 sm:$0xff]  }
  0xb0   :  { %2387 = vmatpush1.bf16.msra.mxu0 %v4309_v40  ;;  %2546 = vmatprep.subr.bf16.mxu1 %v4308_v39  ;;  %v4384_v39 = vld [vmem:[#allocation5 + $0x6d0] ss:$28 sps:$4 sm:$0xff]  }
  0xb1   :  { %2388 = vmatprep.subr.bf16.mxu0 %v4317_v41  ;;  %v4392_v40 = vld [vmem:[#allocation5 + $0x70c] ss:$28 sps:$4 sm:$0xff]  }
  0xb2   :  { %v4393_v41 = vld [vmem:[#allocation5 + $0x770] ss:$28 sps:$4 sm:$0xff]  }
  0xb3   :  { %2547 = vmatpush1.bf16.msra.mxu1 %v4306_v42  ;;  %v4401_v42 = vld [vmem:[#allocation5 + $0x7ac] ss:$28 sps:$4 sm:$0xff]  }
  0xb4   :  { %2389 = vmatpush1.bf16.msra.mxu0 %v4315_v44  ;;  %2548 = vmatprep.subr.bf16.mxu1 %v4314_v43  ;;  %v4390_v43 = vld [vmem:[#allocation5 + $0x708] ss:$28 sps:$4 sm:$0xff]  }
  0xb5   :  { %2390 = vmatprep.subr.bf16.mxu0 %v4323_v45  ;;  %v4398_v44 = vld [vmem:[#allocation5 + $0x744] ss:$28 sps:$4 sm:$0xff]  }
  0xb6   :  { %v4399_v45 = vld [vmem:[#allocation5 + $0x7a8] ss:$28 sps:$4 sm:$0xff]  }
  0xb7   :  { %2549 = vmatpush1.bf16.msra.mxu1 %v4312_v46  ;;  %v4407_v46 = vld [vmem:[#allocation5 + $0x7e4] ss:$28 sps:$4 sm:$0xff]  }
  0xb8   :  { %2391 = vmatpush1.bf16.msra.mxu0 %v4321_v48  ;;  %2550 = vmatprep.subr.bf16.mxu1 %v4320_v47  ;;  %v4396_v47 = vld [vmem:[#allocation5 + $0x740] ss:$28 sps:$4 sm:$0xff]  }
  0xb9   :  { %2392 = vmatprep.subr.bf16.mxu0 %v4329_v49  ;;  %v4404_v48 = vld [vmem:[#allocation5 + $0x77c] ss:$28 sps:$4 sm:$0xff]  }
  0xba   :  { %v4405_v49 = vld [vmem:[#allocation5 + $0x7e0] ss:$28 sps:$4 sm:$0xff]  }
  0xbb   :  { %2551 = vmatpush1.bf16.msra.mxu1 %v4318_v50  ;;  %v4413_v50 = vld [vmem:[#allocation5 + $0x81c] ss:$28 sps:$4 sm:$0xff]  }
  0xbc   :  { %2393 = vmatpush1.bf16.msra.mxu0 %v4327_v52  ;;  %2552 = vmatprep.subr.bf16.mxu1 %v4326_v51  ;;  %v4402_v51 = vld [vmem:[#allocation5 + $0x778] ss:$28 sps:$4 sm:$0xff]  }
  0xbd   :  { %2394 = vmatprep.subr.bf16.mxu0 %v4335_v53  ;;  %v4411_v52 = vld [vmem:[#allocation5 + $0x818] ss:$28 sps:$4 sm:$0xff]  }
  0xbe   :  { %v4410_v53 = vld [vmem:[#allocation5 + $0x7b4] ss:$28 sps:$4 sm:$0xff]  }
  0xbf   :  { %2553 = vmatpush1.bf16.msra.mxu1 %v4324_v54  ;;  %v4419_v54 = vld [vmem:[#allocation5 + $0x854] ss:$28 sps:$4 sm:$0xff]  }
  0xc0   :  { %2395 = vmatpush1.bf16.msra.mxu0 %v4333_v56  ;;  %2554 = vmatprep.subr.bf16.mxu1 %v4332_v55  ;;  %v4408_v55 = vld [vmem:[#allocation5 + $0x7b0] ss:$28 sps:$4 sm:$0xff]  }
  0xc1   :  { %2396 = vmatprep.subr.bf16.mxu0 %v4341_v57  ;;  %v4416_v56 = vld [vmem:[#allocation5 + $0x7ec] ss:$28 sps:$4 sm:$0xff]  }
  0xc2   :  { %v4417_v57 = vld [vmem:[#allocation5 + $0x850] ss:$28 sps:$4 sm:$0xff]  }
  0xc3   :  { %2555 = vmatpush1.bf16.msra.mxu1 %v4330_v58  ;;  %v4425_v58 = vld [vmem:[#allocation5 + $0x88c] ss:$28 sps:$4 sm:$0xff]  }
  0xc4   :  { %2397 = vmatpush1.bf16.msra.mxu0 %v4339_v60  ;;  %2556 = vmatprep.subr.bf16.mxu1 %v4338_v59  ;;  %v4414_v59 = vld [vmem:[#allocation5 + $0x7e8] ss:$28 sps:$4 sm:$0xff]  }
  0xc5   :  { %2398 = vmatprep.subr.bf16.mxu0 %v4347_v61  ;;  %v4422_v60 = vld [vmem:[#allocation5 + $0x824] ss:$28 sps:$4 sm:$0xff]  }
  0xc6   :  { %v4423_v61 = vld [vmem:[#allocation5 + $0x888] ss:$28 sps:$4 sm:$0xff]  }
  0xc7   :  { %2557 = vmatpush1.bf16.msra.mxu1 %v4336_v62  ;;  %v4431_v62 = vld [vmem:[#allocation5 + $0x8c4] ss:$28 sps:$4 sm:$0xff]  }
  0xc8   :  { %2399 = vmatpush1.bf16.msra.mxu0 %v4345_v1  ;;  %2558 = vmatprep.subr.bf16.mxu1 %v4344_v63  ;;  %v4420_v63 = vld [vmem:[#allocation5 + $0x820] ss:$28 sps:$4 sm:$0xff]  }
  0xc9   :  { %2400 = vmatprep.subr.bf16.mxu0 %v4353_v2  ;;  %v4428_v1 = vld [vmem:[#allocation5 + $0x85c] ss:$28 sps:$4 sm:$0xff]  }
  0xca   :  { %v4429_v2 = vld [vmem:[#allocation5 + $0x8c0] ss:$28 sps:$4 sm:$0xff]  }
  0xcb   :  { %2559 = vmatpush1.bf16.msra.mxu1 %v4342_v3  ;;  %v4437_v3 = vld [vmem:[#allocation5 + $0x8fc] ss:$28 sps:$4 sm:$0xff]  }
  0xcc   :  { %2401 = vmatpush1.bf16.msra.mxu0 %v4351_v5  ;;  %2560 = vmatprep.subr.bf16.mxu1 %v4350_v4  ;;  %v4426_v4 = vld [vmem:[#allocation5 + $0x858] ss:$28 sps:$4 sm:$0xff]  }
  0xcd   :  { %2402 = vmatprep.subr.bf16.mxu0 %v4359_v7  ;;  %v4434_v5 = vld [vmem:[#allocation5 + $0x894] ss:$28 sps:$4 sm:$0xff]  }
  0xce   :  { %v4435_v7 = vld [vmem:[#allocation5 + $0x8f8] ss:$28 sps:$4 sm:$0xff]  }
  0xcf   :  { %2561 = vmatpush1.bf16.msra.mxu1 %v4348_v8  ;;  %v4443_v8 = vld [vmem:[#allocation5 + $0x934] ss:$28 sps:$4 sm:$0xff]  }
  0xd0   :  { %2403 = vmatpush1.bf16.msra.mxu0 %v4357_v10  ;;  %2562 = vmatprep.subr.bf16.mxu1 %v4356_v9  ;;  %v4432_v9 = vld [vmem:[#allocation5 + $0x890] ss:$28 sps:$4 sm:$0xff]  }
  0xd1   :  { %2404 = vmatprep.subr.bf16.mxu0 %v4365_v11  ;;  %v4441_v10 = vld [vmem:[#allocation5 + $0x930] ss:$28 sps:$4 sm:$0xff]  }
  0xd2   :  { %v4440_v11 = vld [vmem:[#allocation5 + $0x8cc] ss:$28 sps:$4 sm:$0xff]  }
  0xd3   :  { %2563 = vmatpush1.bf16.msra.mxu1 %v4354_v13  ;;  %v4449_v13 = vld [vmem:[#allocation5 + $0x96c] ss:$28 sps:$4 sm:$0xff]  }
  0xd4   :  { %2405 = vmatpush1.bf16.msra.mxu0 %v4363_v15  ;;  %2564 = vmatprep.subr.bf16.mxu1 %v4362_v14  ;;  %v4438_v14 = vld [vmem:[#allocation5 + $0x8c8] ss:$28 sps:$4 sm:$0xff]  }
  0xd5   :  { %2406 = vmatprep.subr.bf16.mxu0 %v4371_v16  ;;  %v4446_v15 = vld [vmem:[#allocation5 + $0x904] ss:$28 sps:$4 sm:$0xff]  }
  0xd6   :  { %v4447_v16 = vld [vmem:[#allocation5 + $0x968] ss:$28 sps:$4 sm:$0xff]  }
  0xd7   :  { %2565 = vmatpush1.bf16.msra.mxu1 %v4360_v18  ;;  %v4455_v18 = vld [vmem:[#allocation5 + $0x9a4] ss:$28 sps:$4 sm:$0xff]  }
  0xd8   :  { %2407 = vmatpush1.bf16.msra.mxu0 %v4369_v22  ;;  %2566 = vmatprep.subr.bf16.mxu1 %v4368_v21  ;;  %v4444_v21 = vld [vmem:[#allocation5 + $0x900] ss:$28 sps:$4 sm:$0xff]  }
  0xd9   :  { %2408 = vmatprep.subr.bf16.mxu0 %v4377_v26  ;;  %v4452_v22 = vld [vmem:[#allocation5 + $0x93c] ss:$28 sps:$4 sm:$0xff]  }
  0xda   :  { %v4453_v26 = vld [vmem:[#allocation5 + $0x9a0] ss:$28 sps:$4 sm:$0xff]  }
  0xdb   :  { %2567 = vmatpush1.bf16.msra.mxu1 %v4366_v28  ;;  %v4461_v28 = vld [vmem:[#allocation5 + $0x9dc] ss:$28 sps:$4 sm:$0xff]  }
  0xdc   :  { %2409 = vmatpush1.bf16.msra.mxu0 %v4375_v17  ;;  %2568 = vmatprep.subr.bf16.mxu1 %v4374_v29  ;;  %v4450_v29 = vld [vmem:[#allocation5 + $0x938] ss:$28 sps:$4 sm:$0xff]  }
  0xdd   :  { %2419 = vmatprep.subr.bf16.mxu0 %v4383_v30  ;;  %v4458_v17 = vld [vmem:[#allocation5 + $0x974] ss:$28 sps:$4 sm:$0xff]  }
  0xde   :  { %v4459_v30 = vld [vmem:[#allocation5 + $0x9d8] ss:$28 sps:$4 sm:$0xff]  }
  0xdf   :  { %2411 = vmatmul.mubr.bf16.vlgmr.msra.gmra.mrb[0].mxu0 %v5024_v34  ;;  %2569 = vmatpush1.bf16.msra.mxu1 %v4372_v32  ;;  %v4467_v32 = vld [vmem:[#allocation5 + $0xa14] ss:$28 sps:$4 sm:$0xff]  }
  0xe0   :  { %2420 = vmatpush1.bf16.msra.mxu0 %v4381_v35  ;;  %2570 = vmatprep.subr.bf16.mxu1 %v4380_v33  ;;  %v4456_v33 = vld [vmem:[#allocation5 + $0x970] ss:$28 sps:$4 sm:$0xff]  }
  0xe1   :  { %2421 = vmatprep.subr.bf16.mxu0 %v4389_v36  ;;  %2451 = vmatprep.mubr.bf16.mxu0 %v5018_v31  ;;  %v4464_v35 = vld [vmem:[#allocation5 + $0x9ac] ss:$28 sps:$4 sm:$0xff]  }
  0xe2   :  { %v4465_v36 = vld [vmem:[#allocation5 + $0xa10] ss:$28 sps:$4 sm:$0xff]  }
  0xe3   :  { %2571 = vmatpush1.bf16.msra.mxu1 %v4378_v37  ;;  %v4473_v37 = vld [vmem:[#allocation5 + $0xa4c] ss:$28 sps:$4 sm:$0xff]  }
  0xe4   :  { %2422 = vmatpush1.bf16.msra.mxu0 %v4387_v38  ;;  %2572 = vmatprep.subr.bf16.mxu1 %v4386_v19  ;;  %v4462_v19 = vld [vmem:[#allocation5 + $0x9a8] ss:$28 sps:$4 sm:$0xff]  }
  0xe5   :  { %2423 = vmatprep.subr.bf16.mxu0 %v4395_v12  ;;  %v4471_v38 = vld [vmem:[#allocation5 + $0xa48] ss:$28 sps:$4 sm:$0xff]  }
  0xe6   :  { %v4470_v12 = vld [vmem:[#allocation5 + $0x9e4] ss:$28 sps:$4 sm:$0xff]  }
  0xe7   :  { %2573 = vmatpush1.bf16.msra.mxu1 %v4384_v39  ;;  %v4479_v39 = vld [vmem:[#allocation5 + $0x14] ss:$28 sps:$4 sm:$0xff]  }
  0xe8   :  { %2424 = vmatpush1.bf16.msra.mxu0 %v4393_v41  ;;  %2583 = vmatprep.subr.bf16.mxu1 %v4392_v40  ;;  %v4468_v40 = vld [vmem:[#allocation5 + $0x9e0] ss:$28 sps:$4 sm:$0xff]  }
  0xe9   :  { %2425 = vmatprep.subr.bf16.mxu0 %v4401_v42  ;;  %v4476_v41 = vld [vmem:[#allocation5 + $0xa1c] ss:$28 sps:$4 sm:$0xff]   ;;  %v4477_v42 = vld [vmem:[#allocation5 + $0x10] ss:$28 sps:$4 sm:$0xff]  }
  0xea   :  { %2575 = vmatmul.mubr.bf16.vlgmr.msra.gmra.mrb[4].mxu1 %v5024_v34 }
  0xeb   :  { %2584 = vmatpush1.bf16.msra.mxu1 %v4390_v43  ;;  %2615 = vmatprep.mubr.bf16.mxu1 %v5018_v31  ;;  %v4485_v43 = vld [vmem:[#allocation5 + $0x4c] ss:$28 sps:$4 sm:$0xff]  }
  0xec   :  { %2426 = vmatpush1.bf16.msra.mxu0 %v4399_v45  ;;  %2585 = vmatprep.subr.bf16.mxu1 %v4398_v44  ;;  %v4474_v44 = vld [vmem:[#allocation5 + $0xa18] ss:$28 sps:$4 sm:$0xff]  }
  0xed   :  { %2427 = vmatprep.subr.bf16.mxu0 %v4407_v46  ;;  %v4482_v45 = vld [vmem:[#allocation5 + $0xa54] ss:$28 sps:$4 sm:$0xff]   ;;  %v4483_v46 = vld [vmem:[#allocation5 + $0x48] ss:$28 sps:$4 sm:$0xff]  }
  0xef   :  { %2586 = vmatpush1.bf16.msra.mxu1 %v4396_v47  ;;  %v4488_v47 = vld [vmem:[#allocation5 + $0x84] ss:$28 sps:$4 sm:$0xff]  }
  0xf0   :  { %2428 = vmatpush1.bf16.msra.mxu0 %v4405_v49  ;;  %2587 = vmatprep.subr.bf16.mxu1 %v4404_v48  ;;  %v4480_v48 = vld [vmem:[#allocation5 + $0xa50] ss:$28 sps:$4 sm:$0xff]   ;;  %v4486_v49 = vld [vmem:[#allocation5 + $0x80] ss:$28 sps:$4 sm:$0xff]  }
  0xf1   :  { %2429 = vmatprep.subr.bf16.mxu0 %v4413_v50  ;;  %v4491_v50 = vld [vmem:[#allocation5 + $0xbc] ss:$28 sps:$4 sm:$0xff]  }
  0xf3   :  { %2588 = vmatpush1.bf16.msra.mxu1 %v4402_v51  ;;  %v4494_v51 = vld [vmem:[#allocation5 + $0xa8c] ss:$28 sps:$4 sm:$0xff]  }
  0xf4   :  { %2430 = vmatpush1.bf16.msra.mxu0 %v4411_v52  ;;  %2589 = vmatprep.subr.bf16.mxu1 %v4410_v53  ;;  %v4489_v52 = vld [vmem:[#allocation5 + $0xb8] ss:$28 sps:$4 sm:$0xff]   ;;  %v4492_v53 = vld [vmem:[#allocation5 + $0xa88] ss:$28 sps:$4 sm:$0xff]  }
  0xf5   :  { %2431 = vmatprep.subr.bf16.mxu0 %v4419_v54  ;;  %v4497_v54 = vld [vmem:[#allocation5 + $0xf4] ss:$28 sps:$4 sm:$0xff]  }
  0xf7   :  { %2590 = vmatpush1.bf16.msra.mxu1 %v4408_v55  ;;  %v4516_v55 = vld [vmem:[#allocation5 + $0x1d8] ss:$28 sps:$4 sm:$0xff]  }
  0xf8   :  { %2432 = vmatpush1.bf16.msra.mxu0 %v4417_v57  ;;  %2591 = vmatprep.subr.bf16.mxu1 %v4416_v56  ;;  %v4495_v56 = vld [vmem:[#allocation5 + $0xf0] ss:$28 sps:$4 sm:$0xff]  }
  0xf9   :  { %2433 = vmatprep.subr.bf16.mxu0 %v4425_v58  ;;  %v4500_v57 = vld [vmem:[#allocation5 + $0x12c] ss:$28 sps:$4 sm:$0xff]  }
  0xfa   :  { %v4498_v58 = vld [vmem:[#allocation5 + $0x128] ss:$28 sps:$4 sm:$0xff]  }
  0xfb   :  { %2592 = vmatpush1.bf16.msra.mxu1 %v4414_v59  ;;  %v4503_v59 = vld [vmem:[#allocation5 + $0x164] ss:$28 sps:$4 sm:$0xff]  }
  0xfc   :  { %2434 = vmatpush1.bf16.msra.mxu0 %v4423_v61  ;;  %2593 = vmatprep.subr.bf16.mxu1 %v4422_v60  ;;  %v4501_v60 = vld [vmem:[#allocation5 + $0x160] ss:$28 sps:$4 sm:$0xff]  }
  0xfd   :  { %2435 = vmatprep.subr.bf16.mxu0 %v4431_v62  ;;  %v4506_v61 = vld [vmem:[#allocation5 + $0x19c] ss:$28 sps:$4 sm:$0xff]  }
  0xfe   :  { %v4517_v62 = vld [vmem:[#allocation5 + $0x18] ss:$28 sps:$4 sm:$0xff]  }
  0xff   :  { %2594 = vmatpush1.bf16.msra.mxu1 %v4420_v63  ;;  %v4521_v63 = vld [vmem:[#allocation5 + $0x210] ss:$28 sps:$4 sm:$0xff]  }
 0x100   :  { %2436 = vmatpush1.bf16.msra.mxu0 %v4429_v2  ;;  %2595 = vmatprep.subr.bf16.mxu1 %v4428_v1  ;;  %v4504_v1 = vld [vmem:[#allocation5 + $0x198] ss:$28 sps:$4 sm:$0xff]  }
 0x101   :  { %2437 = vmatprep.subr.bf16.mxu0 %v4437_v3  ;;  %v4509_v2 = vld [vmem:[#allocation5 + $0x1d4] ss:$28 sps:$4 sm:$0xff]  }
 0x102   :  { %v4522_v3 = vld [vmem:[#allocation5 + $0x50] ss:$28 sps:$4 sm:$0xff]  }
 0x103   :  { %2596 = vmatpush1.bf16.msra.mxu1 %v4426_v4  ;;  %v4526_v4 = vld [vmem:[#allocation5 + $0x248] ss:$28 sps:$4 sm:$0xff]  }
 0x104   :  { %2438 = vmatpush1.bf16.msra.mxu0 %v4435_v7  ;;  %2597 = vmatprep.subr.bf16.mxu1 %v4434_v5  ;;  %v4507_v5 = vld [vmem:[#allocation5 + $0x1d0] ss:$28 sps:$4 sm:$0xff]  }
 0x105   :  { %2439 = vmatprep.subr.bf16.mxu0 %v4443_v8  ;;  %v4512_v7 = vld [vmem:[#allocation5 + $0x20c] ss:$28 sps:$4 sm:$0xff]  }
 0x106   :  { %v4527_v8 = vld [vmem:[#allocation5 + $0x88] ss:$28 sps:$4 sm:$0xff]  }
 0x107   :  { %2598 = vmatpush1.bf16.msra.mxu1 %v4432_v9  ;;  %v4531_v9 = vld [vmem:[#allocation5 + $0x280] ss:$28 sps:$4 sm:$0xff]  }
 0x108   :  { %2440 = vmatpush1.bf16.msra.mxu0 %v4441_v10  ;;  %2599 = vmatprep.subr.bf16.mxu1 %v4440_v11  ;;  %v4510_v11 = vld [vmem:[#allocation5 + $0x208] ss:$28 sps:$4 sm:$0xff]  }
 0x109   :  { %2441 = vmatprep.subr.bf16.mxu0 %v4449_v13  ;;  %v4532_v13 = vld [vmem:[#allocation5 + $0xc0] ss:$28 sps:$4 sm:$0xff]  }
 0x10b   :  { %2600 = vmatpush1.bf16.msra.mxu1 %v4438_v14 }
 0x10c   :  { %2442 = vmatpush1.bf16.msra.mxu0 %v4447_v16  ;;  %2601 = vmatprep.subr.bf16.mxu1 %v4446_v15  ;;  %v4515_v16 = vld [vmem:[#allocation5 + $0x244] ss:$28 sps:$4 sm:$0xff]  }
 0x10d   :  { %2443 = vmatprep.subr.bf16.mxu0 %v4455_v18 }
 0x10f   :  { %2602 = vmatpush1.bf16.msra.mxu1 %v4444_v21  ;;  %v4513_v21 = vld [vmem:[#allocation5 + $0x240] ss:$28 sps:$4 sm:$0xff]  }
 0x110   :  { %2444 = vmatpush1.bf16.msra.mxu0 %v4453_v26  ;;  %2603 = vmatprep.subr.bf16.mxu1 %v4452_v22  ;;  %v4520_v22 = vld [vmem:[#allocation5 + $0x27c] ss:$28 sps:$4 sm:$0xff]  }
 0x111   :  { %2445 = vmatprep.subr.bf16.mxu0 %v4461_v28  ;;  %v4537_v26 = vld [vmem:[#allocation5 + $0xf8] ss:$28 sps:$4 sm:$0xff]   ;;  %v4541_v28 = vld [vmem:[#allocation5 + $0x2f0] ss:$28 sps:$4 sm:$0xff]  }
 0x113   :  { %2604 = vmatpush1.bf16.msra.mxu1 %v4450_v29  ;;  %v4518_v29 = vld [vmem:[#allocation5 + $0x278] ss:$28 sps:$4 sm:$0xff]  }
 0x114   :  { %2446 = vmatpush1.bf16.msra.mxu0 %v4459_v30  ;;  %2605 = vmatprep.subr.bf16.mxu1 %v4458_v17  ;;  %v4525_v17 = vld [vmem:[#allocation5 + $0x2b4] ss:$28 sps:$4 sm:$0xff]  }
 0x115   :  { %2447 = vmatprep.subr.bf16.mxu0 %v4467_v32  ;;  %v4542_v30 = vld [vmem:[#allocation5 + $0x130] ss:$28 sps:$4 sm:$0xff]   ;;  %v4546_v32 = vld [vmem:[#allocation5 + $0x328] ss:$28 sps:$4 sm:$0xff]  }
 0x117   :  { %2606 = vmatpush1.bf16.msra.mxu1 %v4456_v33  ;;  %v4523_v33 = vld [vmem:[#allocation5 + $0x2b0] ss:$28 sps:$4 sm:$0xff]  }
 0x118   :  { %2448 = vmatpush1.bf16.msra.mxu0 %v4465_v36  ;;  %2607 = vmatprep.subr.bf16.mxu1 %v4464_v35  ;;  %v4530_v35 = vld [vmem:[#allocation5 + $0x2ec] ss:$28 sps:$4 sm:$0xff]  }
 0x119   :  { %2449 = vmatprep.subr.bf16.mxu0 %v4473_v37  ;;  %v4547_v36 = vld [vmem:[#allocation5 + $0x168] ss:$28 sps:$4 sm:$0xff]   ;;  %v4551_v37 = vld [vmem:[#allocation5 + $0x360] ss:$28 sps:$4 sm:$0xff]  }
 0x11b   :  { %2608 = vmatpush1.bf16.msra.mxu1 %v4462_v19  ;;  %v4528_v19 = vld [vmem:[#allocation5 + $0x2e8] ss:$28 sps:$4 sm:$0xff]  }
 0x11c   :  { %2450 = vmatpush1.bf16.msra.mxu0 %v4471_v38  ;;  %2609 = vmatprep.subr.bf16.mxu1 %v4470_v12  ;;  %v4535_v38 = vld [vmem:[#allocation5 + $0x324] ss:$28 sps:$4 sm:$0xff]  }
 0x11d   :  { %2665 = vmatprep.subr.bf16.mxu0 %v4479_v39  ;;  %v4552_v12 = vld [vmem:[#allocation5 + $0x1a0] ss:$28 sps:$4 sm:$0xff]   ;;  %v4556_v39 = vld [vmem:[#allocation5 + $0x558] ss:$28 sps:$4 sm:$0xff]  }
 0x11f   :  { %2452 = vmatmul.mubr.bf16.vlgmr.msra.gmra.mrb[0].mxu0 %v4992_v23  ;;  %2610 = vmatpush1.bf16.msra.mxu1 %v4468_v40  ;;  %v4533_v40 = vld [vmem:[#allocation5 + $0x320] ss:$28 sps:$4 sm:$0xff]  }
 0x120   :  { %2666 = vmatpush1.bf16.msra.mxu0 %v4477_v42  ;;  %2611 = vmatprep.subr.bf16.mxu1 %v4476_v41  ;;  %v4540_v41 = vld [vmem:[#allocation5 + $0x35c] ss:$28 sps:$4 sm:$0xff]  }
 0x121   :  { %2667 = vmatprep.subr.bf16.mxu0 %v4485_v43  ;;  %2697 = vmatprep.mubr.bf16.mxu0 %v4995_v25  ;;  %v4557_v42 = vld [vmem:[#allocation5 + $0x398] ss:$28 sps:$4 sm:$0xff]   ;;  %v4561_v43 = vld [vmem:[#allocation5 + $0x590] ss:$28 sps:$4 sm:$0xff]  }
 0x123   :  { %2612 = vmatpush1.bf16.msra.mxu1 %v4474_v44  ;;  %v4538_v44 = vld [vmem:[#allocation5 + $0x358] ss:$28 sps:$4 sm:$0xff]  }
 0x124   :  { %2668 = vmatpush1.bf16.msra.mxu0 %v4483_v46  ;;  %2613 = vmatprep.subr.bf16.mxu1 %v4482_v45  ;;  %v4545_v45 = vld [vmem:[#allocation5 + $0x394] ss:$28 sps:$4 sm:$0xff]  }
 0x125   :  { %2669 = vmatprep.subr.bf16.mxu0 %v4488_v47  ;;  %v4562_v46 = vld [vmem:[#allocation5 + $0x3d0] ss:$28 sps:$4 sm:$0xff]   ;;  %v4566_v47 = vld [vmem:[#allocation5 + $0x5c8] ss:$28 sps:$4 sm:$0xff]  }
 0x127   :  { %2614 = vmatpush1.bf16.msra.mxu1 %v4480_v48  ;;  %v4543_v48 = vld [vmem:[#allocation5 + $0x390] ss:$28 sps:$4 sm:$0xff]  }
 0x128   :  { %2670 = vmatpush1.bf16.msra.mxu0 %v4486_v49  ;;  %2624 = vmatprep.subr.bf16.mxu1 %v4494_v51  ;;  %v4550_v49 = vld [vmem:[#allocation5 + $0x3cc] ss:$28 sps:$4 sm:$0xff]   ;;  %v4571_v51 = vld [vmem:[#allocation5 + $0x600] ss:$28 sps:$4 sm:$0xff]  }
 0x129   :  { %2671 = vmatprep.subr.bf16.mxu0 %v4491_v50  ;;  %v4567_v50 = vld [vmem:[#allocation5 + $0x408] ss:$28 sps:$4 sm:$0xff]  }
 0x12a   :  { %2616 = vmatmul.mubr.bf16.vlgmr.msra.gmra.mrb[4].mxu1 %v4992_v23 }
 0x12b   :  { %2625 = vmatpush1.bf16.msra.mxu1 %v4492_v53  ;;  %2656 = vmatprep.mubr.bf16.mxu1 %v4881_v0  ;;  %v4572_v53 = vld [vmem:[#allocation5 + $0x440] ss:$28 sps:$4 sm:$0xff]  }
 0x12c   :  { %2672 = vmatpush1.bf16.msra.mxu0 %v4489_v52  ;;  %3986 = vmatprep.subr.bf16.mxu1 %v4516_v55  ;;  %v4548_v52 = vld [vmem:[#allocation5 + $0x3c8] ss:$28 sps:$4 sm:$0xff]   ;;  %v4576_v55 = vld [vmem:[#allocation5 + $0x638] ss:$28 sps:$4 sm:$0xff]  }
 0x12d   :  { %2673 = vmatprep.subr.bf16.mxu0 %v4497_v54  ;;  %v4555_v54 = vld [vmem:[#allocation5 + $0x404] ss:$28 sps:$4 sm:$0xff]  }
 0x130   :  { %2674 = vmatpush1.bf16.msra.mxu0 %v4495_v56  ;;  %v4553_v56 = vld [vmem:[#allocation5 + $0x400] ss:$28 sps:$4 sm:$0xff]  }
 0x131   :  { %2675 = vmatprep.subr.bf16.mxu0 %v4500_v57  ;;  %v4577_v57 = vld [vmem:[#allocation5 + $0x478] ss:$28 sps:$4 sm:$0xff]  }
 0x134   :  { %2676 = vmatpush1.bf16.msra.mxu0 %v4498_v58  ;;  %v4560_v58 = vld [vmem:[#allocation5 + $0x43c] ss:$28 sps:$4 sm:$0xff]  }
 0x135   :  { %2677 = vmatprep.subr.bf16.mxu0 %v4503_v59  ;;  %v4581_v59 = vld [vmem:[#allocation5 + $0x670] ss:$28 sps:$4 sm:$0xff]  }
 0x136   :  { %3933 = vmatmul.mubr.msk.bf16.vlgmr.msra.gmra.mrb[4].mxu1 %vm2333_vm0, %v4999_v27 }
 0x137   :  { %3987 = vmatpush3.bf16.msra.mxu1 %v4517_v62  ;;  %2861 = vmatprep.mubr.bf16.mxu1 %v4995_v25  ;;  %v4536_v25 = vld [vmem:[#allocation5 + $0x2b8] ss:$28 sps:$4 sm:$0xff]   ;;  %v4586_v62 = vld [vmem:[#allocation5 + $0x6a8] ss:$28 sps:$4 sm:$0xff]  }
 0x138   :  { %2678 = vmatpush1.bf16.msra.mxu0 %v4501_v60  ;;  %3988 = vmatprep.subr.bf16.mxu1 %v4521_v63  ;;  %v4558_v60 = vld [vmem:[#allocation5 + $0x438] ss:$28 sps:$4 sm:$0xff]   ;;  %v4563_v63 = vld [vmem:[#allocation5 + $0x470] ss:$28 sps:$4 sm:$0xff]  }
 0x139   :  { %2679 = vmatprep.subr.bf16.mxu0 %v4506_v61  ;;  %v4565_v61 = vld [vmem:[#allocation5 + $0x474] ss:$28 sps:$4 sm:$0xff]  }
 0x13b   :  { %3989 = vmatpush3.bf16.msra.mxu1 %v4522_v3  ;;  %v4568_v3 = vld [vmem:[#allocation5 + $0x4a8] ss:$28 sps:$4 sm:$0xff]  }
 0x13c   :  { %2680 = vmatpush1.bf16.msra.mxu0 %v4504_v1  ;;  %3990 = vmatprep.subr.bf16.mxu1 %v4526_v4  ;;  %v4570_v1 = vld [vmem:[#allocation5 + $0x4ac] ss:$28 sps:$4 sm:$0xff]   ;;  %v4592_v4 = vld [vmem:[#allocation5 + $0x520] ss:$28 sps:$4 sm:$0xff]  }
 0x13d   :  { %2681 = vmatprep.subr.bf16.mxu0 %v4509_v2  ;;  %v5037_v10 = vpop.f32.mrb[0].mxu1  ;;  %v4587_v2 = vld [vmem:[#allocation5 + $0x4e8] ss:$28 sps:$4 sm:$0xff]  }
 0x13e   :  { %v5039_v14 = vpop.f32.mrb[1].mxu1 }
 0x13f   :  { %3991 = vmatpush3.bf16.msra.mxu1 %v4527_v8  ;;  %v2498_v15 = vpop.f32.mrb[2].mxu1  ;;  %v4573_v8 = vld [vmem:[#allocation5 + $0x4e0] ss:$28 sps:$4 sm:$0xff]  }
 0x140   :  { %2682 = vmatpush1.bf16.msra.mxu0 %v4507_v5  ;;  %3992 = vmatprep.subr.bf16.mxu1 %v4531_v9  ;;  %v2499_v18 = vpop.f32.mrb[3].mxu1  ;;  %v4575_v5 = vld [vmem:[#allocation5 + $0x4e4] ss:$28 sps:$4 sm:$0xff]   ;;  %v4597_v9 = vld [vmem:[#allocation5 + $0x718] ss:$28 sps:$4 sm:$0xff]  }
 0x141   :  { %2683 = vmatprep.subr.bf16.mxu0 %v4512_v7  ;;  %v4596_v7 = vld [vmem:[#allocation5 + $0x8d8] ss:$28 sps:$4 sm:$0xff]   ;;  %v4606_v18 = vld [vmem:[#allocation5 + $0x948] ss:$28 sps:$4 sm:$0xff]  }
 0x142   :  { %v4578_v15 = vld [vmem:[#allocation5 + $0x518] ss:$28 sps:$4 sm:$0xff]  }
 0x143   :  { %3993 = vmatpush3.bf16.msra.mxu1 %v4532_v13  ;;  %v4601_v13 = vld [vmem:[#allocation5 + $0x910] ss:$28 sps:$4 sm:$0xff]  }
 0x144   :  { %2684 = vmatpush1.bf16.msra.mxu0 %v4510_v11  ;;  %3994 = vmatprep.subr.bf16.mxu1 %v4536_v25  ;;  %v4580_v11 = vld [vmem:[#allocation5 + $0x51c] ss:$28 sps:$4 sm:$0xff]   ;;  %v4585_v25 = vld [vmem:[#allocation5 + $0x554] ss:$28 sps:$4 sm:$0xff]  }
 0x145   :  { %2685 = vmatprep.subr.bf16.mxu0 %v4515_v16  ;;  %v4602_v16 = vld [vmem:[#allocation5 + $0x750] ss:$28 sps:$4 sm:$0xff]  }
 0x147   :  { %3995 = vmatpush3.bf16.msra.mxu1 %v4537_v26  ;;  %v4590_v26 = vld [vmem:[#allocation5 + $0x58c] ss:$28 sps:$4 sm:$0xff]  }
 0x148   :  { %2686 = vmatpush1.bf16.msra.mxu0 %v4513_v21  ;;  %3996 = vmatprep.subr.bf16.mxu1 %v4541_v28  ;;  %v4583_v21 = vld [vmem:[#allocation5 + $0x550] ss:$28 sps:$4 sm:$0xff]   ;;  %v4611_v28 = vld [vmem:[#allocation5 + $0x980] ss:$28 sps:$4 sm:$0xff]  }
 0x149   :  { %2687 = vmatprep.subr.bf16.mxu0 %v4520_v22  ;;  %v4607_v22 = vld [vmem:[#allocation5 + $0x788] ss:$28 sps:$4 sm:$0xff]  }
 0x14b   :  { %3997 = vmatpush3.bf16.msra.mxu1 %v4542_v30  ;;  %v4595_v30 = vld [vmem:[#allocation5 + $0x5c4] ss:$28 sps:$4 sm:$0xff]  }
 0x14c   :  { %2688 = vmatpush1.bf16.msra.mxu0 %v4518_v29  ;;  %3998 = vmatprep.subr.bf16.mxu1 %v4546_v32  ;;  %v4588_v29 = vld [vmem:[#allocation5 + $0x588] ss:$28 sps:$4 sm:$0xff]   ;;  %v4616_v32 = vld [vmem:[#allocation5 + $0x9b8] ss:$28 sps:$4 sm:$0xff]  }
 0x14d   :  { %2689 = vmatprep.subr.bf16.mxu0 %v4525_v17  ;;  %v4612_v17 = vld [vmem:[#allocation5 + $0x7c0] ss:$28 sps:$4 sm:$0xff]  }
 0x14f   :  { %3999 = vmatpush3.bf16.msra.mxu1 %v4547_v36  ;;  %v4600_v36 = vld [vmem:[#allocation5 + $0x5fc] ss:$28 sps:$4 sm:$0xff]  }
 0x150   :  { %2690 = vmatpush1.bf16.msra.mxu0 %v4523_v33  ;;  %4000 = vmatprep.subr.bf16.mxu1 %v4551_v37  ;;  %v4593_v33 = vld [vmem:[#allocation5 + $0x5c0] ss:$28 sps:$4 sm:$0xff]   ;;  %v4621_v37 = vld [vmem:[#allocation5 + $0x9f0] ss:$28 sps:$4 sm:$0xff]  }
 0x151   :  { %2691 = vmatprep.subr.bf16.mxu0 %v4530_v35  ;;  %v4617_v35 = vld [vmem:[#allocation5 + $0x7f8] ss:$28 sps:$4 sm:$0xff]  }
 0x153   :  { %4001 = vmatpush3.bf16.msra.mxu1 %v4552_v12  ;;  %v4605_v12 = vld [vmem:[#allocation5 + $0x634] ss:$28 sps:$4 sm:$0xff]  }
 0x154   :  { %2692 = vmatpush1.bf16.msra.mxu0 %v4528_v19  ;;  %4008 = vmatprep.subr.bf16.mxu1 %v4556_v39  ;;  %v4598_v19 = vld [vmem:[#allocation5 + $0x5f8] ss:$28 sps:$4 sm:$0xff]   ;;  %v4626_v39 = vld [vmem:[#allocation5 + $0xa28] ss:$28 sps:$4 sm:$0xff]  }
 0x155   :  { %2693 = vmatprep.subr.bf16.mxu0 %v4535_v38  ;;  %v4622_v38 = vld [vmem:[#allocation5 + $0x830] ss:$28 sps:$4 sm:$0xff]  }
 0x156   :  { %2862 = vmatmul.mubr.bf16.vlgmr.msra.gmra.mrb[8].mxu1 %v5007_v20 }
 0x157   :  { %4009 = vmatpush3.bf16.msra.mxu1 %v4557_v42  ;;  %2901 = vmatprep.mubr.bf16.mxu1 %v5011_v24  ;;  %v4610_v42 = vld [vmem:[#allocation5 + $0x66c] ss:$28 sps:$4 sm:$0xff]  }
 0x158   :  { %2694 = vmatpush1.bf16.msra.mxu0 %v4533_v40  ;;  %4010 = vmatprep.subr.bf16.mxu1 %v4561_v43  ;;  %v4603_v40 = vld [vmem:[#allocation5 + $0x630] ss:$28 sps:$4 sm:$0xff]   ;;  %v4631_v43 = vld [vmem:[#allocation5 + $0xa60] ss:$28 sps:$4 sm:$0xff]  }
 0x159   :  { %2695 = vmatprep.subr.bf16.mxu0 %v4540_v41  ;;  %v4627_v41 = vld [vmem:[#allocation5 + $0x868] ss:$28 sps:$4 sm:$0xff]  }
 0x15b   :  { %4011 = vmatpush3.bf16.msra.mxu1 %v4562_v46  ;;  %v4615_v46 = vld [vmem:[#allocation5 + $0x6a4] ss:$28 sps:$4 sm:$0xff]  }
 0x15c   :  { %2696 = vmatpush1.bf16.msra.mxu0 %v4538_v44  ;;  %4012 = vmatprep.subr.bf16.mxu1 %v4566_v47  ;;  %v4608_v44 = vld [vmem:[#allocation5 + $0x668] ss:$28 sps:$4 sm:$0xff]   ;;  %v4613_v47 = vld [vmem:[#allocation5 + $0x6a0] ss:$28 sps:$4 sm:$0xff]  }
 0x15d   :  { %2706 = vmatprep.subr.bf16.mxu0 %v4545_v45  ;;  %v4632_v45 = vld [vmem:[#allocation5 + $0x8a0] ss:$28 sps:$4 sm:$0xff]  }
 0x15f   :  { %2698 = vmatmul.mubr.bf16.vlgmr.msra.gmra.mrb[4].mxu0 %v5007_v20  ;;  %4013 = vmatpush3.bf16.msra.mxu1 %v4567_v50  ;;  %v4582_v20 = vld [vmem:[#allocation5 + $0x4b0] ss:$28 sps:$4 sm:$0xff]   ;;  %v4883_v50 = vmov 0.0  }
 0x160   :  { %2707 = vmatpush1.bf16.msra.mxu0 %v4543_v48  ;;  %4014 = vmatprep.subr.bf16.mxu1 %v4571_v51  ;;  %v4639_v48 = vld [vmem:[#allocation5 + $0xa98] ss:$28 sps:$4 sm:$0xff]   ;;  %v4676_v51 = vld [vmem:[#allocation8 + $0x40] sm:$0xff]  }
 0x161   :  { %2708 = vmatprep.subr.bf16.mxu0 %v4550_v49  ;;  %2738 = vmatprep.mubr.bf16.mxu0 %v5011_v24  ;;  %v4591_v24 = vld [vmem:[#allocation5 + $0x6e0] ss:$28 sps:$4 sm:$0xff]  }
 0x162   :  { %v4620_v49 = vld [vmem:[#allocation5 + $0x6dc] ss:$28 sps:$4 sm:$0xff]  }
 0x163   :  { %4015 = vmatpush3.bf16.msra.mxu1 %v4572_v53  ;;  %v4625_v53 = vld [vmem:[#allocation5 + $0x714] ss:$28 sps:$4 sm:$0xff]  }
 0x164   :  { %2709 = vmatpush1.bf16.msra.mxu0 %v4548_v52  ;;  %4016 = vmatprep.subr.bf16.mxu1 %v4576_v55  ;;  %v4618_v52 = vld [vmem:[#allocation5 + $0x6d8] ss:$28 sps:$4 sm:$0xff]   ;;  %v4677_v55 = vld [vmem:[#allocation8] sm:$0xff]  }
 0x165   :  { %2710 = vmatprep.subr.bf16.mxu0 %v4555_v54  ;;  %v4623_v54 = vld [vmem:[#allocation5 + $0x710] ss:$28 sps:$4 sm:$0xff]  }
 0x167   :  { %4017 = vmatpush3.bf16.msra.mxu1 %v4577_v57  ;;  %v4681_v57 = vld [vmem:[#allocation8 + $0x48] sm:$0xff]  }
 0x168   :  { %2711 = vmatpush1.bf16.msra.mxu0 %v4553_v56  ;;  %4018 = vmatprep.subr.bf16.mxu1 %v4581_v59  ;;  %v4630_v56 = vld [vmem:[#allocation5 + $0x74c] ss:$28 sps:$4 sm:$0xff]  }
 0x169   :  { %2712 = vmatprep.subr.bf16.mxu0 %v4560_v58  ;;  %v4628_v58 = vld [vmem:[#allocation5 + $0x748] ss:$28 sps:$4 sm:$0xff]  }
 0x16a   :  { %v4682_v59 = vld [vmem:[#allocation8 + $0x8] sm:$0xff]  }
 0x16b   :  { %4019 = vmatpush3.bf16.msra.mxu1 %v4582_v20  ;;  %v4683_v20 = vld [vmem:[#allocation8 + $0x50] sm:$0xff]  }
 0x16c   :  { %2713 = vmatpush1.bf16.msra.mxu0 %v4558_v60  ;;  %4020 = vmatprep.subr.bf16.mxu1 %v4586_v62  ;;  %v4635_v60 = vld [vmem:[#allocation5 + $0x784] ss:$28 sps:$4 sm:$0xff]   ;;  %v4684_v62 = vld [vmem:[#allocation8 + $0x10] sm:$0xff]  }
 0x16d   :  { %2714 = vmatprep.subr.bf16.mxu0 %v4565_v61  ;;  %v4633_v61 = vld [vmem:[#allocation5 + $0x780] ss:$28 sps:$4 sm:$0xff]  }
 0x16f   :  { %4021 = vmatpush3.bf16.msra.mxu1 %v4587_v2  ;;  %v4686_v2 = vld [vmem:[#allocation8 + $0x18] sm:$0xff]  }
 0x170   :  { %2715 = vmatpush1.bf16.msra.mxu0 %v4563_v63  ;;  %4022 = vmatprep.subr.bf16.mxu1 %v4591_v24  ;;  %v4638_v63 = vld [vmem:[#allocation5 + $0x7bc] ss:$28 sps:$4 sm:$0xff]   ;;  %v4642_v24 = vld [vmem:[#allocation5 + $0x7f4] ss:$28 sps:$4 sm:$0xff]  }
 0x171   :  { %2716 = vmatprep.subr.bf16.mxu0 %v4570_v1  ;;  %v4636_v1 = vld [vmem:[#allocation5 + $0x7b8] ss:$28 sps:$4 sm:$0xff]  }
 0x173   :  { %4023 = vmatpush3.bf16.msra.mxu1 %v4592_v4  ;;  %v4688_v4 = vld [vmem:[#allocation8 + $0x20] sm:$0xff]  }
 0x174   :  { %2717 = vmatpush1.bf16.msra.mxu0 %v4568_v3  ;;  %4030 = vmatprep.subr.bf16.mxu1 %v4596_v7  ;;  %v4687_v3 = vld [vmem:[#allocation8 + $0x60] sm:$0xff]   ;;  %v4689_v7 = vld [vmem:[#allocation8 + $0x68] sm:$0xff]  }
 0x175   :  { %2718 = vmatprep.subr.bf16.mxu0 %v4575_v5  ;;  %v4645_v5 = vld [vmem:[#allocation5 + $0x82c] ss:$28 sps:$4 sm:$0xff]  }
 0x176   :  { %2902 = vmatmul.mubr.bf16.vlgmr.msra.gmra.mrb[12].mxu1 %v5024_v34 }
 0x177   :  { %4031 = vmatpush3.bf16.msra.mxu1 %v4597_v9  ;;  %2941 = vmatprep.mubr.bf16.mxu1 %v5018_v31  ;;  %v4690_v9 = vld [vmem:[#allocation8 + $0x28] sm:$0xff]  }
 0x178   :  { %2719 = vmatpush1.bf16.msra.mxu0 %v4573_v8  ;;  %4032 = vmatprep.subr.bf16.mxu1 %v4601_v13  ;;  %v4643_v8 = vld [vmem:[#allocation5 + $0x828] ss:$28 sps:$4 sm:$0xff]   ;;  %v4691_v13 = vld [vmem:[#allocation8 + $0x70] sm:$0xff]  }
 0x179   :  { %2720 = vmatprep.subr.bf16.mxu0 %v4580_v11  ;;  %v4648_v11 = vld [vmem:[#allocation5 + $0x864] ss:$28 sps:$4 sm:$0xff]  }
 0x17b   :  { %4033 = vmatpush3.bf16.msra.mxu1 %v4602_v16  ;;  %v4692_v16 = vld [vmem:[#allocation8 + $0x30] sm:$0xff]  }
 0x17c   :  { %2721 = vmatpush1.bf16.msra.mxu0 %v4578_v15  ;;  %4034 = vmatprep.subr.bf16.mxu1 %v4606_v18  ;;  %v4646_v15 = vld [vmem:[#allocation5 + $0x860] ss:$28 sps:$4 sm:$0xff]  }
 0x17d   :  { %2722 = vmatprep.subr.bf16.mxu0 %v4585_v25  ;;  %v4651_v25 = vld [vmem:[#allocation5 + $0x89c] ss:$28 sps:$4 sm:$0xff]  }
 0x17e   :  { %v4693_v18 = vld [vmem:[#allocation8 + $0x78] sm:$0xff]  }
 0x17f   :  { %4035 = vmatpush3.bf16.msra.mxu1 %v4607_v22  ;;  %v4694_v22 = vld [vmem:[#allocation8 + $0x38] sm:$0xff]  }
 0x180   :  { %2723 = vmatpush1.bf16.msra.mxu0 %v4583_v21  ;;  %4036 = vmatprep.subr.bf16.mxu1 %v4611_v28  ;;  %v4649_v21 = vld [vmem:[#allocation5 + $0x898] ss:$28 sps:$4 sm:$0xff]   ;;  %v4695_v28 = vld [vmem:[#allocation8 + $0xc0] sm:$0xff]  }
 0x181   :  { %2724 = vmatprep.subr.bf16.mxu0 %v4590_v26  ;;  %v4654_v26 = vld [vmem:[#allocation5 + $0x8d4] ss:$28 sps:$4 sm:$0xff]  }
 0x183   :  { %4037 = vmatpush3.bf16.msra.mxu1 %v4612_v17  ;;  %v4657_v17 = vld [vmem:[#allocation5 + $0x90c] ss:$28 sps:$4 sm:$0xff]  }
 0x184   :  { %2725 = vmatpush1.bf16.msra.mxu0 %v4588_v29  ;;  %4038 = vmatprep.subr.bf16.mxu1 %v4616_v32  ;;  %v4652_v29 = vld [vmem:[#allocation5 + $0x8d0] ss:$28 sps:$4 sm:$0xff]   ;;  %v4660_v32 = vld [vmem:[#allocation5 + $0x944] ss:$28 sps:$4 sm:$0xff]  }
 0x185   :  { %2726 = vmatprep.subr.bf16.mxu0 %v4595_v30  ;;  %v4655_v30 = vld [vmem:[#allocation5 + $0x908] ss:$28 sps:$4 sm:$0xff]  }
 0x187   :  { %4039 = vmatpush3.bf16.msra.mxu1 %v4617_v35  ;;  %v4663_v35 = vld [vmem:[#allocation5 + $0x97c] ss:$28 sps:$4 sm:$0xff]  }
 0x188   :  { %2727 = vmatpush1.bf16.msra.mxu0 %v4593_v33  ;;  %4040 = vmatprep.subr.bf16.mxu1 %v4621_v37  ;;  %v4658_v33 = vld [vmem:[#allocation5 + $0x940] ss:$28 sps:$4 sm:$0xff]   ;;  %v4666_v37 = vld [vmem:[#allocation5 + $0x9b4] ss:$28 sps:$4 sm:$0xff]  }
 0x189   :  { %2728 = vmatprep.subr.bf16.mxu0 %v4600_v36  ;;  %v4661_v36 = vld [vmem:[#allocation5 + $0x978] ss:$28 sps:$4 sm:$0xff]  }
 0x18b   :  { %4041 = vmatpush3.bf16.msra.mxu1 %v4622_v38  ;;  %v4669_v38 = vld [vmem:[#allocation5 + $0x9ec] ss:$28 sps:$4 sm:$0xff]  }
 0x18c   :  { %2729 = vmatpush1.bf16.msra.mxu0 %v4598_v19  ;;  %4042 = vmatprep.subr.bf16.mxu1 %v4626_v39  ;;  %v4664_v19 = vld [vmem:[#allocation5 + $0x9b0] ss:$28 sps:$4 sm:$0xff]   ;;  %v4672_v39 = vld [vmem:[#allocation5 + $0xa24] ss:$28 sps:$4 sm:$0xff]  }
 0x18d   :  { %2730 = vmatprep.subr.bf16.mxu0 %v4605_v12  ;;  %v4667_v12 = vld [vmem:[#allocation5 + $0x9e8] ss:$28 sps:$4 sm:$0xff]  }
 0x18f   :  { %4043 = vmatpush3.bf16.msra.mxu1 %v4627_v41  ;;  %v4675_v41 = vld [vmem:[#allocation5 + $0xa5c] ss:$28 sps:$4 sm:$0xff]  }
 0x190   :  { %2731 = vmatpush1.bf16.msra.mxu0 %v4603_v40  ;;  %4044 = vmatprep.subr.bf16.mxu1 %v4631_v43  ;;  %v4670_v40 = vld [vmem:[#allocation5 + $0xa20] ss:$28 sps:$4 sm:$0xff]   ;;  %v4680_v43 = vld [vmem:[#allocation5 + $0xa94] ss:$28 sps:$4 sm:$0xff]  }
 0x191   :  { %2732 = vmatprep.subr.bf16.mxu0 %v4610_v42  ;;  %v4673_v42 = vld [vmem:[#allocation5 + $0xa58] ss:$28 sps:$4 sm:$0xff]  }
 0x193   :  { %4045 = vmatpush3.bf16.msra.mxu1 %v4632_v45  ;;  %v2300_v45 = vsub.s32 0, %v4977_v6 }
 0x194   :  { %2733 = vmatpush1.bf16.msra.mxu0 %v4608_v44  ;;  %4122 = vmatprep.subr.bf16.mxu1 %v4883_v50  ;;  %v4678_v44 = vld [vmem:[#allocation5 + $0xa90] ss:$28 sps:$4 sm:$0xff]  }
 0x195   :  { %2734 = vmatprep.subr.bf16.mxu0 %v4615_v46  ;;  %v5061_v46 = vld [vmem:[#allocation7] sm:$0x7f] }
 0x196   :  { %2942 = vmatmul.mubr.bf16.vlgmr.msra.gmra.mrb[16].mxu1 %v4992_v23 }
 0x197   :  { %4123 = vmatpush3.bf16.msra.mxu1 %v4639_v48  ;;  %4124 = vmatprep.mubr.msk.bf16.mxu1 %vm4884_vm1, %v4883_v50  ;;  %v2301_v48 = vrot.slane %v5061_v46, %v2300_v45  ;;  %v4723_v45 = vld [vmem:[#allocation8 + $0x128] sm:$0xff]  }
 0x198   :  { %2735 = vmatpush1.bf16.msra.mxu0 %v4613_v47  ;;  %4054 = vmatprep.subr.bf16.mxu1 %v4676_v51  ;;  %v2304_v47 = vsub.s32 1, %v4977_v6 }
 0x199   :  { %2736 = vmatprep.subr.bf16.mxu0 %v4620_v49 }
 0x19c   :  { %2737 = vmatpush1.bf16.msra.mxu0 %v4618_v52 }
 0x19d   :  { %2747 = vmatprep.subr.bf16.mxu0 %v4625_v53 }
 0x19e   :  { %4125 = vmatmul.mubr.msk.bf16.vlgmr.msra.gmra.mrb[20].mxu1 %vm2333_vm0, %v4999_v27 }
 0x19f   :  { %2739 = vmatmul.mubr.bf16.vlgmr.msra.gmra.mrb[4].mxu0 %v5024_v34  ;;  %4055 = vmatpush3.bf16.msra.mxu1 %v4677_v55  ;;  %v4685_v34 = vld [vmem:[#allocation8 + $0x58] sm:$0xff]  }
 0x1a0   :  { %2748 = vmatpush1.bf16.msra.mxu0 %v4623_v54  ;;  %2779 = vmatprep.mubr.bf16.mxu0 %v5018_v31  ;;  %v4640_v31 = vld [vmem:[#allocation5 + $0x7f0] ss:$28 sps:$4 sm:$0xff]  }
 0x1a1   :  { %2749 = vmatprep.subr.bf16.mxu0 %v4630_v56  ;;  %4056 = vmatprep.subr.bf16.mxu1 %v4681_v57  ;;  %v4711_v57 = vld [vmem:[#allocation8 + $0x180] sm:$0xff]  }
 0x1a3   :  { %4057 = vmatpush3.bf16.msra.mxu1 %v4682_v59 }
 0x1a4   :  { %2750 = vmatpush1.bf16.msra.mxu0 %v4628_v58  ;;  %4058 = vmatprep.subr.bf16.mxu1 %v4683_v20  ;;  %v4697_v20 = vld [vmem:[#allocation8 + $0xc8] sm:$0xff]  }
 0x1a5   :  { %2751 = vmatprep.subr.bf16.mxu0 %v4635_v60 }
 0x1a7   :  { %4059 = vmatpush3.bf16.msra.mxu1 %v4684_v62  ;;  %v4699_v62 = vld [vmem:[#allocation8 + $0xd0] sm:$0xff]  }
 0x1a8   :  { %2752 = vmatpush1.bf16.msra.mxu0 %v4633_v61  ;;  %4060 = vmatprep.subr.bf16.mxu1 %v4685_v34  ;;  %v4698_v61 = vld [vmem:[#allocation8 + $0x88] sm:$0xff]   ;;  %v4702_v34 = vld [vmem:[#allocation8 + $0x98] sm:$0xff]  }
 0x1a9   :  { %2753 = vmatprep.subr.bf16.mxu0 %v4638_v63  ;;  %v4700_v63 = vld [vmem:[#allocation8 + $0x90] sm:$0xff]  }
 0x1ab   :  { %4061 = vmatpush3.bf16.msra.mxu1 %v4686_v2 }
 0x1ac   :  { %2754 = vmatpush1.bf16.msra.mxu0 %v4636_v1  ;;  %4062 = vmatprep.subr.bf16.mxu1 %v4687_v3  ;;  %v4703_v1 = vld [vmem:[#allocation8 + $0xe0] sm:$0xff]  }
 0x1ad   :  { %2755 = vmatprep.subr.bf16.mxu0 %v4642_v24  ;;  %v4704_v3 = vld [vmem:[#allocation8 + $0xa0] sm:$0xff]  }
 0x1af   :  { %4063 = vmatpush3.bf16.msra.mxu1 %v4688_v4 }
 0x1b0   :  { %2756 = vmatpush1.bf16.msra.mxu0 %v4640_v31  ;;  %4064 = vmatprep.subr.bf16.mxu1 %v4689_v7  ;;  %v2308_v31 = vsub.s32 2, %v4977_v6 }
 0x1b1   :  { %2757 = vmatprep.subr.bf16.mxu0 %v4645_v5  ;;  %v4705_v5 = vld [vmem:[#allocation8 + $0xe8] sm:$0xff]  }
 0x1b3   :  { %4065 = vmatpush3.bf16.msra.mxu1 %v4690_v9 }
 0x1b4   :  { %2758 = vmatpush1.bf16.msra.mxu0 %v4643_v8  ;;  %4066 = vmatprep.subr.bf16.mxu1 %v4691_v13  ;;  %v4706_v13 = vld [vmem:[#allocation8 + $0xa8] sm:$0xff]  }
 0x1b5   :  { %2759 = vmatprep.subr.bf16.mxu0 %v4648_v11 }
 0x1b7   :  { %4067 = vmatpush3.bf16.msra.mxu1 %v4692_v16  ;;  %v4707_v16 = vld [vmem:[#allocation8 + $0xf0] sm:$0xff]  }
 0x1b8   :  { %2760 = vmatpush1.bf16.msra.mxu0 %v4646_v15  ;;  %4068 = vmatprep.subr.bf16.mxu1 %v4693_v18  ;;  %v2309_v15 = vrot.slane %v5061_v46, %v2308_v31  ;;  %v4708_v18 = vld [vmem:[#allocation8 + $0xb0] sm:$0xff]  }
 0x1b9   :  { %2761 = vmatprep.subr.bf16.mxu0 %v4651_v25 }
 0x1bb   :  { %4069 = vmatpush3.bf16.msra.mxu1 %v4694_v22  ;;  %v4709_v22 = vld [vmem:[#allocation8 + $0xf8] sm:$0xff]  }
 0x1bc   :  { %2762 = vmatpush1.bf16.msra.mxu0 %v4649_v21  ;;  %4076 = vmatprep.subr.bf16.mxu1 %v4695_v28 }
 0x1bd   :  { %2763 = vmatprep.subr.bf16.mxu0 %v4654_v26  ;;  %v4710_v26 = vld [vmem:[#allocation8 + $0xb8] sm:$0xff]  }
 0x1c0   :  { %2764 = vmatpush1.bf16.msra.mxu0 %v4652_v29  ;;  %v4712_v29 = vld [vmem:[#allocation8 + $0x140] sm:$0xff]  }
 0x1c1   :  { %2765 = vmatprep.subr.bf16.mxu0 %v4657_v17  ;;  %v4713_v17 = vld [vmem:[#allocation8 + $0x100] sm:$0xff]  }
 0x1c4   :  { %2766 = vmatpush1.bf16.msra.mxu0 %v4655_v30 }
 0x1c5   :  { %2767 = vmatprep.subr.bf16.mxu0 %v4660_v32  ;;  %v4714_v32 = vld [vmem:[#allocation8 + $0x148] sm:$0xff]  }
 0x1c8   :  { %2768 = vmatpush1.bf16.msra.mxu0 %v4658_v33  ;;  %v4715_v33 = vld [vmem:[#allocation8 + $0x108] sm:$0xff]  }
 0x1c9   :  { %2769 = vmatprep.subr.bf16.mxu0 %v4663_v35  ;;  %v4716_v35 = vld [vmem:[#allocation8 + $0x150] sm:$0xff]  }
 0x1cc   :  { %2770 = vmatpush1.bf16.msra.mxu0 %v4661_v36  ;;  %v4717_v36 = vld [vmem:[#allocation8 + $0x110] sm:$0xff]  }
 0x1cd   :  { %2771 = vmatprep.subr.bf16.mxu0 %v4666_v37  ;;  %v4718_v37 = vld [vmem:[#allocation8 + $0x158] sm:$0xff]  }
 0x1d0   :  { %2772 = vmatpush1.bf16.msra.mxu0 %v4664_v19  ;;  %v4719_v19 = vld [vmem:[#allocation8 + $0x118] sm:$0xff]  }
 0x1d1   :  { %2773 = vmatprep.subr.bf16.mxu0 %v4669_v38  ;;  %v4720_v38 = vld [vmem:[#allocation8 + $0x160] sm:$0xff]  }
 0x1d4   :  { %2774 = vmatpush1.bf16.msra.mxu0 %v4667_v12 }
 0x1d5   :  { %2775 = vmatprep.subr.bf16.mxu0 %v4672_v39  ;;  %v4721_v39 = vld [vmem:[#allocation8 + $0x120] sm:$0xff]  }
 0x1d8   :  { %2776 = vmatpush1.bf16.msra.mxu0 %v4670_v40 }
 0x1d9   :  { %2777 = vmatprep.subr.bf16.mxu0 %v4675_v41  ;;  %v4722_v41 = vld [vmem:[#allocation8 + $0x168] sm:$0xff]  }
 0x1dc   :  { %2778 = vmatpush1.bf16.msra.mxu0 %v4673_v42 }
 0x1dd   :  { %2788 = vmatprep.subr.bf16.mxu0 %v4680_v43 }
 0x1df   :  { %2780 = vmatmul.mubr.bf16.vlgmr.msra.gmra.mrb[4].mxu0 %v4992_v23  ;;  %v2305_v23 = vrot.slane %v5061_v46, %v2304_v47  ;;  %v2324_v47 = vsub.s32 6, %v4977_v6 }
 0x1e0   :  { %2789 = vmatpush1.bf16.msra.mxu0 %v4678_v44  ;;  %2820 = vmatprep.mubr.bf16.mxu0 %v4881_v0 }
 0x1e1   :  { %4128 = vmatprep.subr.bf16.mxu0 %v4883_v50 }
 0x1eb   :  { %3934 = vmatmul.mubr.msk.bf16.vlgmr.msra.gmra.mrb[4].mxu0 %vm2333_vm0, %v4999_v27 }
 0x1ec   :  { %4130 = vmatprep.mubr.msk.bf16.mxu0 %vm4884_vm1, %v4883_v50  ;;  %4129 = vmatpush3.bf16.msra.mxu0 %v4711_v57  ;;  %v4696_v50 = vld [vmem:[#allocation8 + $0x80] sm:$0xff]  }
 0x1f2   :  { %v2453_v49 = vpop.f32.mrb[0].mxu0 }
 0x1f3   :  { %v4134_v0 = vadd.f32 %v2453_v49, %v2301_v48  ;;  %v2455_v51 = vpop.f32.mrb[1].mxu0  ;;  %v4724_v48 = vld [vmem:[#allocation8 + $0x170] sm:$0xff]   ;;  %v4726_v49 = vld [vmem:[#allocation8 + $0x178] sm:$0xff]  }
 0x1f4   :  { %v4136_v52 = vadd.f32 %v2455_v51, %v2305_v23  ;;  %v2457_v53 = vpop.f32.mrb[2].mxu0  ;;  %v4725_v23 = vld [vmem:[#allocation8 + $0x130] sm:$0xff]   ;;  %v4727_v51 = vld [vmem:[#allocation8 + $0x138] sm:$0xff]  }
 0x1f5   :  { %v4135_v27 = vadd.f32 %v4134_v0, %v5037_v10  ;;  %v2458_v54 = vpop.f32.mrb[3].mxu0  ;;  %v4701_v10 = vld [vmem:[#allocation8 + $0xd8] sm:$0xff]   ;;  %v2325_v0 = vrot.slane %v5061_v46, %v2324_v47 }
 0x1f6   :  { %v4137_v55 = vadd.f32 %v4136_v52, %v5039_v14  ;;  %v2312_v14 = vsub.s32 3, %v4977_v6 }
 0x1f7   :  { %v2989_v56 = vmax.f32 %v4135_v27, 0.0 }
 0x1f8   :  { %v2990_v58 = vmax.f32 %v4137_v55, 0.0  ;;  %v2313_v2 = vrot.slane %v5061_v46, %v2312_v14 }
 0x1f9   :  { %v2996_v60 = vpack.c.bf16 %v2989_v56, %v2989_v56 }
 0x1fa   :  { %v2997_v59 = vpack.c.bf16 %v2990_v58, %v2990_v58 }
 0x1fc   :  { %3431 = vmatprep.mubr.bf16.mxu1 %v2997_v59 }
 0x1fd   :  { %3432 = vmatmul.mubr.bf16.vlgmr.msra.gmra.mrb[24].mxu1 %v2996_v60 }
 0x1fe   :  { %4077 = vmatpush3.bf16.msra.mxu1 %v4696_v50 }
 0x1ff   :  { %4078 = vmatprep.subr.bf16.mxu1 %v4697_v20 }
 0x202   :  { %4079 = vmatpush3.bf16.msra.mxu1 %v4698_v61 }
 0x203   :  { %4080 = vmatprep.subr.bf16.mxu1 %v4699_v62 }
 0x206   :  { %4081 = vmatpush3.bf16.msra.mxu1 %v4700_v63 }
 0x207   :  { %4082 = vmatprep.subr.bf16.mxu1 %v4701_v10 }
 0x209   :  { %v2658_v24 = vpop.f32.mrb[4].mxu1 }
 0x20a   :  { %4083 = vmatpush3.bf16.msra.mxu1 %v4702_v34  ;;  %v2660_v4 = vpop.f32.mrb[5].mxu1  ;;  %v4138_v21 = vadd.f32 %v2658_v24, %v2309_v15  ;;  %v2316_v24 = vsub.s32 4, %v4977_v6 }
 0x20b   :  { %4084 = vmatprep.subr.bf16.mxu1 %v4703_v1  ;;  %v4139_v7 = vadd.f32 %v2660_v4, %v2313_v2  ;;  %v2662_v8 = vpop.f32.mrb[6].mxu1 }
 0x20c   :  { %v2663_v9 = vpop.f32.mrb[7].mxu1  ;;  %v2991_v28 = vmax.f32 %v4138_v21, 0.0  ;;  %v2317_v31 = vrot.slane %v5061_v46, %v2316_v24 }
 0x20d   :  { %v2992_v11 = vmax.f32 %v4139_v7, 0.0 }
 0x20e   :  { %4085 = vmatpush3.bf16.msra.mxu1 %v4704_v3  ;;  %v2998_v30 = vpack.c.bf16 %v2991_v28, %v2991_v28  ;;  %v2320_v3 = vsub.s32 5, %v4977_v6 }
 0x20f   :  { %4086 = vmatprep.subr.bf16.mxu1 %v4705_v5  ;;  %v2999_v25 = vpack.c.bf16 %v2992_v11, %v2992_v11 }
 0x210   :  { %v2321_v4 = vrot.slane %v5061_v46, %v2320_v3 }
 0x211   :  { %3471 = vmatprep.mubr.bf16.mxu1 %v2999_v25 }
 0x212   :  { %4087 = vmatpush3.bf16.msra.mxu1 %v4706_v13 }
 0x213   :  { %4088 = vmatprep.subr.bf16.mxu1 %v4707_v16 }
 0x216   :  { %4089 = vmatpush3.bf16.msra.mxu1 %v4708_v18 }
 0x217   :  { %4090 = vmatprep.subr.bf16.mxu1 %v4709_v22 }
 0x21a   :  { %4091 = vmatpush3.bf16.msra.mxu1 %v4710_v26 }
 0x21b   :  { %4098 = vmatprep.subr.bf16.mxu1 %v4712_v29  ;;  %v3101_v29 = vld [vmem:[#allocation10] sm:$0x1] }
 0x21d   :  { %3472 = vmatmul.mubr.bf16.vlgmr.msra.gmra.mrb[28].mxu1 %v2998_v30 }
 0x21e   :  { %4099 = vmatpush3.bf16.msra.mxu1 %v4713_v17 }
 0x21f   :  { %4100 = vmatprep.subr.bf16.mxu1 %v4714_v32 }
 0x222   :  { %4101 = vmatpush3.bf16.msra.mxu1 %v4715_v33 }
 0x223   :  { %4102 = vmatprep.subr.bf16.mxu1 %v4716_v35 }
 0x226   :  { %4103 = vmatpush3.bf16.msra.mxu1 %v4717_v36 }
 0x227   :  { %4104 = vmatprep.subr.bf16.mxu1 %v4718_v37 }
 0x229   :  { %v4002_v12 = vpop.f32.mrb[8].mxu1 }
 0x22a   :  { %4105 = vmatpush3.bf16.msra.mxu1 %v4719_v19  ;;  %v4003_v40 = vpop.f32.mrb[9].mxu1 }
 0x22b   :  { %4106 = vmatprep.subr.bf16.mxu1 %v4720_v38  ;;  %v4004_v42 = vadd.f32 %v4003_v40, %v4002_v12  ;;  %v4005_v43 = vpop.f32.mrb[10].mxu1 }
 0x22c   :  { %v4006_v44 = vpop.f32.mrb[11].mxu1 }
 0x22d   :  { %v2864_v52 = vadd.f32 %v4004_v42, %v2325_v0 }
 0x22e   :  { %4107 = vmatpush3.bf16.msra.mxu1 %v4721_v39 }
 0x22f   :  { %4108 = vmatprep.subr.bf16.mxu1 %v4722_v41 }
 0x232   :  { %4109 = vmatpush3.bf16.msra.mxu1 %v4723_v45 }
 0x233   :  { %4110 = vmatprep.subr.bf16.mxu1 %v4724_v48 }
 0x236   :  { %4111 = vmatpush3.bf16.msra.mxu1 %v4725_v23 }
 0x237   :  { %4112 = vmatprep.subr.bf16.mxu1 %v4726_v49 }
 0x23a   :  { %4113 = vmatpush3.bf16.msra.mxu1 %v4727_v51 }
 0x249   :  { %v4024_v53 = vpop.f32.mrb[12].mxu1 }
 0x24a   :  { %v4025_v27 = vpop.f32.mrb[13].mxu1 }
 0x24b   :  { %v4026_v54 = vadd.f32 %v4025_v27, %v4024_v53  ;;  %v4027_v55 = vpop.f32.mrb[14].mxu1 }
 0x24c   :  { %v4028_v56 = vpop.f32.mrb[15].mxu1 }
 0x24d   :  { %v2904_v57 = vadd.f32 %v4026_v54, %v2864_v52 }
 0x269   :  { %v4046_v58 = vpop.f32.mrb[16].mxu1 }
 0x26a   :  { %v4047_v59 = vpop.f32.mrb[17].mxu1 }
 0x26b   :  { %v4048_v50 = vadd.f32 %v4047_v59, %v4046_v58  ;;  %v4049_v60 = vpop.f32.mrb[18].mxu1 }
 0x26c   :  { %v4050_v20 = vpop.f32.mrb[19].mxu1 }
 0x26d   :  { %v2944_v61 = vadd.f32 %v4048_v50, %v2904_v57 }
 0x271   :  { %v2983_v62 = vpop.f32.mrb[20].mxu1 }
 0x272   :  { %v2984_v63 = vadd.f32 %v2983_v62, %v2944_v61  ;;  %v4126_v10 = vpop.f32.mrb[21].mxu1 }
 0x273   :  { %v2986_v14 = vpop.f32.mrb[22].mxu1 }
 0x274   :  { %v2995_v34 = vmax.f32 %v2984_v63, 0.0  ;;  %v4127_v1 = vpop.f32.mrb[23].mxu1 }
 0x276   :  { %v3002_v2 = vpack.c.bf16 %v2995_v34, %v2995_v34 }
 0x278   :  { %4131 = vmatmul.mubr.msk.bf16.vlgmr.msra.gmra.mrb[8].mxu0 %vm2333_vm0, %v3002_v2 }
 0x2be   :  { %v2822_v5 = vpop.f32.mrb[4].mxu0 }
 0x2bf   :  { %v4140_v7 = vadd.f32 %v2822_v5, %v2317_v31  ;;  %v2824_v8 = vpop.f32.mrb[5].mxu0 }
 0x2c0   :  { %v4141_v9 = vadd.f32 %v2824_v8, %v2321_v4  ;;  %v2826_v11 = vpop.f32.mrb[6].mxu0 }
 0x2c1   :  { %v2993_v13 = vmax.f32 %v4140_v7, 0.0  ;;  %v2827_v15 = vpop.f32.mrb[7].mxu0 }
 0x2c2   :  { %v2994_v16 = vmax.f32 %v4141_v9, 0.0 }
 0x2c3   :  { %v3000_v18 = vpack.c.bf16 %v2993_v13, %v2993_v13 }
 0x2c4   :  { %v3001_v25 = vpack.c.bf16 %v2994_v16, %v2994_v16 }
 0x2c6   :  { %3511 = vmatprep.mubr.bf16.mxu1 %v3001_v25 }
 0x2c7   :  { %3512 = vmatmul.mubr.bf16.vlgmr.msra.gmra.mrb[32].mxu1 %v3000_v18 }
 0x2d0   :  { %v4070_v21 = vpop.f32.mrb[24].mxu1 }
 0x2d1   :  { %v4071_v22 = vpop.f32.mrb[25].mxu1 }
 0x2d2   :  { %v4072_v26 = vadd.f32 %v4071_v22, %v4070_v21  ;;  %v4073_v6 = vpop.f32.mrb[26].mxu1 }
 0x2d3   :  { %v4074_v28 = vpop.f32.mrb[27].mxu1 }
 0x2d4   :  { %v3434_v30 = vadd.f32 %v4072_v26, %v3101_v29 }
 0x2f0   :  { %v4092_v17 = vpop.f32.mrb[28].mxu1 }
 0x2f1   :  { %v4093_v46 = vpop.f32.mrb[29].mxu1 }
 0x2f2   :  { %v4094_v32 = vadd.f32 %v4093_v46, %v4092_v17  ;;  %v4095_v33 = vpop.f32.mrb[30].mxu1 }
 0x2f3   :  { %v4096_v35 = vpop.f32.mrb[31].mxu1 }
 0x2f4   :  { %v3474_v36 = vadd.f32 %v4094_v32, %v3434_v30 }
 0x34b   :  { %v3553_v37 = vpop.f32.mrb[8].mxu0 }
 0x34c   :  { %v4132_v19 = vpop.f32.mrb[9].mxu0 }
 0x34d   :  { %v3556_v38 = vpop.f32.mrb[10].mxu0 }
 0x34e   :  { %v4133_v12 = vpop.f32.mrb[11].mxu0 }
 0x39a   :  { %v4114_v39 = vpop.f32.mrb[32].mxu1 }
 0x39b   :  { %v4115_v40 = vpop.f32.mrb[33].mxu1 }
 0x39c   :  { %v4116_v41 = vadd.f32 %v4115_v40, %v4114_v39  ;;  %v4117_v42 = vpop.f32.mrb[34].mxu1 }
 0x39d   :  { %v4118_v43 = vpop.f32.mrb[35].mxu1 }
 0x39e   :  { %v3514_v44 = vadd.f32 %v4116_v41, %v3474_v36 }
 0x3a0   :  { %v3554_v45 = vadd.f32 %v3553_v37, %v3514_v44 }
 0x3a2   :  { %v3560_v47 = vsel %vm3559_vm2, %v3554_v45, -inf }
 0x3a3   :  { %3561 = vmax.xlane.f32.xlu0 %v3560_v47 }
 0x430   :  { %v3562_v48 = vpop.xlane.xlu0 %3561 }
 0x431   :  { %v3563_v23 = vsub.f32 %v3554_v45, %v3562_v48 }
 0x433   :  { %v3564_v49 = vmul.f32 1.442695, %v3563_v23 }
 0x435   :  { %4728 = vpow2.f32 %v3564_v49 }
 0x43f   :  { %v4729_v0 = vpop.eup %4728 }
 0x440   :  { %v3566_v51 = vsel %vm3559_vm2, %v4729_v0, 0.0 }
 0x441   :  { %3567 = vadd.xlane.f32.xlu0 %v3566_v51 }
 0x4ce   :  { %v3568_v52 = vpop.xlane.xlu0 %3567 }
 0x4cf   :  { %4730 = vrcp.f32 %v3568_v52 }
 0x4d9   :  { %v4731_v53 = vpop.eup %4730 }
 0x4da   :  { %v3570_v27 = vmul.f32 %v4731_v53, %v4729_v0 }
 0x4dc   :  { %3571 = vst [vmem:[#allocation11] sm:$0x1] %v3570_v27 }
 0x4dd   :  { %4853 = shalt.err (!%p4850_p2)
}
 0x4de   :  { %s4854_s9 = scalar_lea.hbm %s5098_s5, 16 }
 0x4df   :  { %p4855_p3 = scmp.ne.s32.totalorder %s5098_s5, %s4854_s9  ;;  %p4858_p4 = scmp.lt.u32.totalorder %s4854_s9, %s5098_s5 }
 0x4e1   :  { %p4860_p5 = pnand %p4858_p4, %p4855_p3 }
 0x4e3   :  { %4863 = shalt.err (!%p4860_p5)
}
 0x4e4   :  { %3581 = dma.vmem_to_hbm [thread:$0]  %s3579_s30, 16, %s5098_s5, [#allocation4]  }
 0x4e5   :  { %4870 = dma.done.wait [#allocation4], 16  }
 0x4e6   :  { %4871 = vsyncadd [#allocation4], 4294967280 }
 0x4e7   :  { %3585 = vsyncpa [#allocation3], 1 }
 0x4e8   :  { %3586 = vsyncpa [#allocation6], 1 }
 0x4e9   :  { %3587 = vsyncpa [#allocation9], 1 }
 0x4ea   :  { %3588 = vsyncpa [#allocation4], 1 }

</bundles_post_ra>
